<compile_context>
chip_gen: v6e
topology: v6e:2x2x1
jax: 0.10.0
libtpu: 0.0.40
codegen_flags: <defaults>
</compile_context>

<pallas_src>
import functools
import math

import jax
import jax.numpy as jnp
from jax import lax
from jax.experimental import pallas as pl
from jax.experimental.pallas import tpu as pltpu


_NEG = -1e9
_VMEM_LIMIT = 64 * 1024 * 1024   # explicit scoped-VMEM limit (<= v7x per-core VMEM)


# ----------------------------------------------------------------------------
# Math helpers (shared by the kernels and the pure-JAX reference)
# ----------------------------------------------------------------------------

def _mm(a, b):
    """bf16-operand MXU matmul with f32 accumulation."""
    return jnp.dot(a.astype(jnp.bfloat16), b.astype(jnp.bfloat16),
                   preferred_element_type=jnp.float32)


def _layer_norm(x, g, b, eps=1e-5):
    mu = jnp.mean(x, axis=-1, keepdims=True)
    xc = x - mu
    var = jnp.mean(xc * xc, axis=-1, keepdims=True)
    return xc * lax.rsqrt(var + eps) * g + b


def _erf(x):
    # Abramowitz & Stegun 7.1.26 rational approximation (|err| < 1.5e-7).
    # Uses only abs/exp/mul/add/select, all of which lower on the TPU VPU/EUP.
    a1, a2, a3, a4, a5 = 0.254829592, -0.284496736, 1.421413741, -1.453152027, 1.061405429
    p = 0.3275911
    ax = jnp.abs(x)
    t = 1.0 / (1.0 + p * ax)
    poly = t * (a1 + t * (a2 + t * (a3 + t * (a4 + t * a5))))
    y = 1.0 - poly * jnp.exp(-ax * ax)
    return jnp.where(x < 0.0, -y, y)


def _gelu(x):
    # Exact (erf-form) GELU, matching PyTorch's default activation='gelu'.
    return 0.5 * x * (1.0 + _erf(x * (1.0 / math.sqrt(2.0))))


def _mha_into(attn_ref, q, k, v, bias, num_heads):
    """Multi-head attention.  Per-head context is stored directly into the VMEM
    scratch `attn_ref` at static lane offsets (no live list + lane concat).
    MXU operands are bf16; scores, mask bias, exp and normalization stay f32."""
    D = q.shape[-1]
    dh = D // num_heads
    qb = q.astype(jnp.bfloat16)
    kb = k.astype(jnp.bfloat16)
    vb = v.astype(jnp.bfloat16)
    for h in range(num_heads):
        lo = h * dh
        s = lax.dot_general(qb[:, lo:lo + dh], kb[:, lo:lo + dh],
                            (((1,), (1,)), ((), ())),
                            preferred_element_type=jnp.float32) + bias
        m = jnp.max(s, axis=-1, keepdims=True)
        p = jnp.exp(s - m)
        w = p * pl.reciprocal(jnp.sum(p, axis=-1, keepdims=True), approx=True)
        attn_ref[:, lo:lo + dh] = jnp.dot(w.astype(jnp.bfloat16), vb[:, lo:lo + dh],
                                          preferred_element_type=jnp.float32)
    return attn_ref[...]


# ----------------------------------------------------------------------------
# Kernels
# ----------------------------------------------------------------------------

def _encoder_layer_kernel(x_ref, bias_ref,
                          wqkv_ref, bqkv_ref, wo_ref, bo_ref,
                          ln1g_ref, ln1b_ref,
                          wff1_ref, bff1_ref, wff2_ref, bff2_ref,
                          ln2g_ref, ln2b_ref,
                          out_ref, attn_scr, *, num_heads):
    x = x_ref[0]                                           # (S, D) f32
    D = x.shape[-1]
    scale = 1.0 / math.sqrt(D // num_heads)

    qkv = _mm(x, wqkv_ref[...]) + bqkv_ref[...]            # fused QKV projection
    q = qkv[:, :D] * scale                                 # fold softmax scale into q
    k = qkv[:, D:2 * D]
    v = qkv[:, 2 * D:]
    ctx = _mha_into(attn_scr, q, k, v, bias_ref[0], num_heads)   # bias (1, S)
    attn = _mm(ctx, wo_ref[...]) + bo_ref[...]
    h1 = _layer_norm(x + attn, ln1g_ref[...], ln1b_ref[...])

    f = _gelu(_mm(h1, wff1_ref[...]) + bff1_ref[...])
    f = _mm(f, wff2_ref[...]) + bff2_ref[...]
    out_ref[0] = _layer_norm(h1 + f, ln2g_ref[...], ln2b_ref[...]).astype(out_ref.dtype)


def _decoder_stack_kernel(tgt_ref, mem_ref, tbias_ref, mbias_ref,
                          wsqkv_ref, bsqkv_ref, wso_ref, bso_ref, ln1g_ref, ln1b_ref,
                          wcq_ref, bcq_ref, wckv_ref, bckv_ref, wco_ref, bco_ref,
                          ln2g_ref, ln2b_ref,
                          wff1_ref, bff1_ref, wff2_ref, bff2_ref, ln3g_ref, ln3b_ref,
                          out_ref, y_scr, attn_scr, *, num_heads):
    l = pl.program_id(1)

    @pl.when(l == 0)
    def _():                                               # layer-0 input = tgt embeddings
        y_scr[...] = tgt_ref[0]

    x = y_scr[...]                                         # (St, D) f32, resident across layers
    mem = mem_ref[0]                                       # (Ss, D) f32
    St, D = x.shape
    scale = 1.0 / math.sqrt(D // num_heads)

    # Causal mask generated in-kernel (VPU compares); only the (1, St) padding
    # bias is streamed from HBM.
    row = lax.broadcasted_iota(jnp.int32, (St, St), 0)
    col = lax.broadcasted_iota(jnp.int32, (St, St), 1)
    self_bias = jnp.where(col > row, jnp.float32(_NEG), jnp.float32(0.0)) + tbias_ref[0]

    # --- masked self-attention ---
    qkv = _mm(x, wsqkv_ref[0]) + bsqkv_ref[0]
    q = qkv[:, :D] * scale
    k = qkv[:, D:2 * D]
    v = qkv[:, 2 * D:]
    sa = _mm(_mha_into(attn_scr, q, k, v, self_bias, num_heads), wso_ref[0]) + bso_ref[0]
    h1 = _layer_norm(x + sa, ln1g_ref[0], ln1b_ref[0])

    # --- cross-attention over encoder memory ---
    q2 = (_mm(h1, wcq_ref[0]) + bcq_ref[0]) * scale
    kv2 = _mm(mem, wckv_ref[0]) + bckv_ref[0]              # fused K/V projection
    ca = _mm(_mha_into(attn_scr, q2, kv2[:, :D], kv2[:, D:], mbias_ref[0], num_heads),
             wco_ref[0]) + bco_ref[0]
    h2 = _layer_norm(h1 + ca, ln2g_ref[0], ln2b_ref[0])

    # --- feed-forward ---
    f = _gelu(_mm(h2, wff1_ref[0]) + bff1_ref[0])
    f = _mm(f, wff2_ref[0]) + bff2_ref[0]
    y = _layer_norm(h2 + f, ln3g_ref[0], ln3b_ref[0])

    y_scr[...] = y                                         # carried to the next layer

    @pl.when(l == pl.num_programs(1) - 1)
    def _():
        out_ref[0] = y.astype(out_ref.dtype)


def _linear_kernel(x_ref, w_ref, b_ref, out_ref):
    out_ref[0] = (_mm(x_ref[0], w_ref[...]) + b_ref[...]).astype(out_ref.dtype)


# ----------------------------------------------------------------------------
# pallas_call wrappers
# ----------------------------------------------------------------------------

def _const_spec(shape):
    n = len(shape)
    return pl.BlockSpec(shape, lambda *args, n=n: (0,) * n)


def encoder_layer(x, bias, p, *, num_heads):
    B, S, D = x.shape
    F = p['w_ff1'].shape[1]
    bf = jnp.bfloat16
    kernel = functools.partial(_encoder_layer_kernel, num_heads=num_heads)
    return pl.pallas_call(
        kernel,
        out_shape=jax.ShapeDtypeStruct((B, S, D), jnp.float32),
        grid=(B,),
        in_specs=[
            pl.BlockSpec((1, S, D), lambda b: (b, 0, 0)),
            pl.BlockSpec((1, 1, S), lambda b: (b, 0, 0)),
            _const_spec((D, 3 * D)), _const_spec((1, 3 * D)),
            _const_spec((D, D)), _const_spec((1, D)),
            _const_spec((1, D)), _const_spec((1, D)),
            _const_spec((D, F)), _const_spec((1, F)),
            _const_spec((F, D)), _const_spec((1, D)),
            _const_spec((1, D)), _const_spec((1, D)),
        ],
        out_specs=pl.BlockSpec((1, S, D), lambda b: (b, 0, 0)),
        scratch_shapes=[pltpu.VMEM((S, D), jnp.float32)],
        compiler_params=pltpu.CompilerParams(
            dimension_semantics=("parallel",),
            vmem_limit_bytes=_VMEM_LIMIT),
    )(x, bias,
      p['w_qkv'].astype(bf), p['b_qkv'], p['w_o'].astype(bf), p['b_o'],
      p['ln1_g'], p['ln1_b'],
      p['w_ff1'].astype(bf), p['b_ff1'], p['w_ff2'].astype(bf), p['b_ff2'],
      p['ln2_g'], p['ln2_b'])


_DEC_KEYS = ('w_self_qkv', 'b_self_qkv', 'w_self_o', 'b_self_o', 'ln1_g', 'ln1_b',
             'w_cross_q', 'b_cross_q', 'w_cross_kv', 'b_cross_kv',
             'w_cross_o', 'b_cross_o', 'ln2_g', 'ln2_b',
             'w_ff1', 'b_ff1', 'w_ff2', 'b_ff2', 'ln3_g', 'ln3_b')


def _stack_decoder_params(layer_params):
    stacked = {}
    for key in _DEC_KEYS:
        arr = jnp.stack([lp[key] for lp in layer_params], axis=0)
        if key.startswith('w_'):
            arr = arr.astype(jnp.bfloat16)      # bf16 weights: MXU-native, half the DMA
        stacked[key] = arr
    return stacked


def decoder_stack(tgt_emb, memory, tgt_pad_bias, mem_bias, layer_params, *, num_heads):
    B, St, D = tgt_emb.shape
    Ss = memory.shape[1]
    L = len(layer_params)
    stacked = _stack_decoder_params(layer_params)

    w_specs = [pl.BlockSpec((1,) + tuple(stacked[k].shape[1:]),
                            lambda b, l: (l, 0, 0)) for k in _DEC_KEYS]

    kernel = functools.partial(_decoder_stack_kernel, num_heads=num_heads)
    return pl.pallas_call(
        kernel,
        out_shape=jax.ShapeDtypeStruct((B, St, D), jnp.float32),
        grid=(B, L),
        in_specs=[
            pl.BlockSpec((1, St, D), lambda b, l: (b, 0, 0)),
            pl.BlockSpec((1, Ss, D), lambda b, l: (b, 0, 0)),
            pl.BlockSpec((1, 1, St), lambda b, l: (b, 0, 0)),
            pl.BlockSpec((1, 1, Ss), lambda b, l: (b, 0, 0)),
        ] + w_specs,
        out_specs=pl.BlockSpec((1, St, D), lambda b, l: (b, 0, 0)),
        scratch_shapes=[pltpu.VMEM((St, D), jnp.float32),   # activations across layers
                        pltpu.VMEM((St, D), jnp.float32)],  # attention head outputs
        compiler_params=pltpu.CompilerParams(
            dimension_semantics=("parallel", "arbitrary"),
            vmem_limit_bytes=_VMEM_LIMIT),
    )(tgt_emb, memory, tgt_pad_bias, mem_bias, *[stacked[k] for k in _DEC_KEYS])


def linear_out(x, w, b, *, tile_v=128):
    B, S, D = x.shape
    V = w.shape[1]
    if V % tile_v != 0:
        tile_v = V                         # fall back to a single (untiled) block
    return pl.pallas_call(
        _linear_kernel,
        out_shape=jax.ShapeDtypeStruct((B, S, V), jnp.float32),
        grid=(B, V // tile_v),
        in_specs=[
            pl.BlockSpec((1, S, D), lambda b, j: (b, 0, 0)),
            pl.BlockSpec((D, tile_v), lambda b, j: (0, j)),
            pl.BlockSpec((1, tile_v), lambda b, j: (0, j)),
        ],
        out_specs=pl.BlockSpec((1, S, tile_v), lambda b, j: (b, 0, j)),
        compiler_params=pltpu.CompilerParams(
            dimension_semantics=("parallel", "parallel"),
            vmem_limit_bytes=_VMEM_LIMIT),
    )(x, w.astype(jnp.bfloat16), b)


# ----------------------------------------------------------------------------
# Model-level forward
# ----------------------------------------------------------------------------

def _prepare_inputs(src, tgt, params):
    B, Ss = src.shape
    St = tgt.shape[1]
    pe = params['pe']

    src_pad_bias = jnp.where(src == 0, _NEG, 0.0).astype(jnp.float32).reshape(B, 1, Ss)
    tgt_pad_bias = jnp.where(tgt == 0, _NEG, 0.0).astype(jnp.float32).reshape(B, 1, St)

    # TODO(synk): token-embedding gather + positional-encoding add stay in plain
    # JAX (data-dependent gather has no clean BlockSpec tiling); all dropout
    # layers are eval-mode identities.
    src_emb = params['emb'][src] + pe[:Ss]
    tgt_emb = params['emb'][tgt] + pe[:St]
    return src_emb, tgt_emb, src_pad_bias, tgt_pad_bias


def transformer_forward(src, tgt, params, *, num_heads):
    src_emb, tgt_emb, src_bias, tgt_pad_bias = _prepare_inputs(src, tgt, params)
    memory = encoder_layer(src_emb, src_bias, params['encoder'], num_heads=num_heads)
    y = decoder_stack(tgt_emb, memory, tgt_pad_bias, src_bias,
                      params['decoder_layers'], num_heads=num_heads)
    return linear_out(y, params['w_out'], params['b_out'])


# ----------------------------------------------------------------------------
# Pure-JAX reference (mirrors the kernel math: bf16 GEMM operands, f32 accum)
# ----------------------------------------------------------------------------

def _ref_attention(q, k, v, bias, num_heads):
    B, Sq, D = q.shape
    Sk = k.shape[1]
    dh = D // num_heads
    qh = q.astype(jnp.bfloat16).reshape(B, Sq, num_heads, dh).transpose(0, 2, 1, 3)
    kh = k.astype(jnp.bfloat16).reshape(B, Sk, num_heads, dh).transpose(0, 2, 1, 3)
    vh = v.astype(jnp.bfloat16).reshape(B, Sk, num_heads, dh).transpose(0, 2, 1, 3)
    s = jnp.einsum('bhqd,bhkd->bhqk', qh, kh,
                   preferred_element_type=jnp.float32) + bias[:, None, :, :]
    w = jax.nn.softmax(s, axis=-1)
    ctx = jnp.einsum('bhqk,bhkd->bhqd', w.astype(jnp.bfloat16), vh,
                     preferred_element_type=jnp.float32)
    return ctx.transpose(0, 2, 1, 3).reshape(B, Sq, D)


def _ref_encoder_layer(x, bias, p, num_heads):
    D = x.shape[-1]
    scale = 1.0 / math.sqrt(D // num_heads)
    qkv = _mm(x, p['w_qkv']) + p['b_qkv']
    q, k, v = qkv[..., :D] * scale, qkv[..., D:2 * D], qkv[..., 2 * D:]
    attn = _mm(_ref_attention(q, k, v, bias, num_heads), p['w_o']) + p['b_o']
    h1 = _layer_norm(x + attn, p['ln1_g'], p['ln1_b'])
    f = _mm(_gelu(_mm(h1, p['w_ff1']) + p['b_ff1']), p['w_ff2']) + p['b_ff2']
    return _layer_norm(h1 + f, p['ln2_g'], p['ln2_b'])


def _ref_decoder_layer(x, mem, self_bias, mem_bias, p, num_heads):
    D = x.shape[-1]
    scale = 1.0 / math.sqrt(D // num_heads)
    qkv = _mm(x, p['w_self_qkv']) + p['b_self_qkv']
    q, k, v = qkv[..., :D] * scale, qkv[..., D:2 * D], qkv[..., 2 * D:]
    sa = _mm(_ref_attention(q, k, v, self_bias, num_heads), p['w_self_o']) + p['b_self_o']
    h1 = _layer_norm(x + sa, p['ln1_g'], p['ln1_b'])

    q2 = (_mm(h1, p['w_cross_q']) + p['b_cross_q']) * scale
    kv2 = _mm(mem, p['w_cross_kv']) + p['b_cross_kv']
    ca = _mm(_ref_attention(q2, kv2[..., :D], kv2[..., D:], mem_bias, num_heads),
             p['w_cross_o']) + p['b_cross_o']
    h2 = _layer_norm(h1 + ca, p['ln2_g'], p['ln2_b'])

    f = _mm(_gelu(_mm(h2, p['w_ff1']) + p['b_ff1']), p['w_ff2']) + p['b_ff2']
    return _layer_norm(h2 + f, p['ln3_g'], p['ln3_b'])


def transformer_reference(src, tgt, params, *, num_heads):
    src_emb, tgt_emb, src_bias, tgt_pad_bias = _prepare_inputs(src, tgt, params)
    St = tgt.shape[1]
    causal = jnp.triu(jnp.full((St, St), _NEG, jnp.float32), k=1)
    tgt_self_bias = causal[None, :, :] + tgt_pad_bias          # (B, St, St)

    memory = _ref_encoder_layer(src_emb, src_bias, params['encoder'], num_heads)
    y = tgt_emb
    for lp in params['decoder_layers']:
        y = _ref_decoder_layer(y, memory, tgt_self_bias, src_bias, lp, num_heads)
    return _mm(y, params['w_out']) + params['b_out']


# ----------------------------------------------------------------------------
# Parameter / input construction
# ----------------------------------------------------------------------------

def _make_pe(max_len, d_model):
    pos = jnp.arange(max_len, dtype=jnp.float32)[:, None]
    div = jnp.exp(jnp.arange(0, d_model, 2, dtype=jnp.float32)
                  * (-math.log(10000.0) / d_model))
    pe = jnp.zeros((max_len, d_model), jnp.float32)
    pe = pe.at[:, 0::2].set(jnp.sin(pos * div))
    pe = pe.at[:, 1::2].set(jnp.cos(pos * div))
    return pe


def init_params(key, vocab, d_model, d_ff, num_layers, max_len):
    keys = iter(jax.random.split(key, 256))

    def u(shape, fan_in):
        b = 1.0 / math.sqrt(fan_in)
        return jax.random.uniform(next(keys), shape, jnp.float32, -b, b)

    def enc_layer():
        return {
            'w_qkv': u((d_model, 3 * d_model), d_model),
            'b_qkv': u((1, 3 * d_model), d_model),
            'w_o': u((d_model, d_model), d_model),
            'b_o': u((1, d_model), d_model),
            'ln1_g': jnp.ones((1, d_model), jnp.float32),
            'ln1_b': jnp.zeros((1, d_model), jnp.float32),
            'w_ff1': u((d_model, d_ff), d_model),
            'b_ff1': u((1, d_ff), d_model),
            'w_ff2': u((d_ff, d_model), d_ff),
            'b_ff2': u((1, d_model), d_ff),
            'ln2_g': jnp.ones((1, d_model), jnp.float32),
            'ln2_b': jnp.zeros((1, d_model), jnp.float32),
        }

    def dec_layer():
        return {
            'w_self_qkv': u((d_model, 3 * d_model), d_model),
            'b_self_qkv': u((1, 3 * d_model), d_model),
            'w_self_o': u((d_model, d_model), d_model),
            'b_self_o': u((1, d_model), d_model),
            'ln1_g': jnp.ones((1, d_model), jnp.float32),
            'ln1_b': jnp.zeros((1, d_model), jnp.float32),
            'w_cross_q': u((d_model, d_model), d_model),
            'b_cross_q': u((1, d_model), d_model),
            'w_cross_kv': u((d_model, 2 * d_model), d_model),
            'b_cross_kv': u((1, 2 * d_model), d_model),
            'w_cross_o': u((d_model, d_model), d_model),
            'b_cross_o': u((1, d_model), d_model),
            'ln2_g': jnp.ones((1, d_model), jnp.float32),
            'ln2_b': jnp.zeros((1, d_model), jnp.float32),
            'w_ff1': u((d_model, d_ff), d_model),
            'b_ff1': u((1, d_ff), d_model),
            'w_ff2': u((d_ff, d_model), d_ff),
            'b_ff2': u((1, d_model), d_ff),
            'ln3_g': jnp.ones((1, d_model), jnp.float32),
            'ln3_b': jnp.zeros((1, d_model), jnp.float32),
        }

    return {
        'emb': jax.random.normal(next(keys), (vocab, d_model), jnp.float32),
        'pe': _make_pe(max_len, d_model),
        'encoder': enc_layer(),
        'decoder_layers': [dec_layer() for _ in range(num_layers)],
        'w_out': u((d_model, vocab), d_model),
        'b_out': u((1, vocab), d_model),
    }


# ----------------------------------------------------------------------------
# Self-test
# ----------------------------------------------------------------------------

if __name__ == "__main__":
    B, S, VOCAB, D, H, NUM_LAYERS = 2, 8, 256, 32, 4, 2
    D_FF = D  # module sets dim_feedforward = embedding_dim

    key = jax.random.PRNGKey(0)
    params = init_params(key, VOCAB, D, D_FF, NUM_LAYERS, max_len=S)

    ks, kt = jax.random.split(jax.random.fold_in(key, 123))
    src = jax.random.randint(ks, (B, S), 1, VOCAB).astype(jnp.int32)
    tgt = jax.random.randint(kt, (B, S), 1, VOCAB).astype(jnp.int32)
    src = src.at[:, -1].set(0)  # exercise the src key-padding mask
    tgt = tgt.at[:, -1].set(0)  # exercise the tgt key-padding mask

    logits = transformer_forward(src, tgt, params, num_heads=H)
    logits = jax.block_until_ready(logits)
    assert logits.shape == (B, S, VOCAB)

    ref = transformer_reference(src, tgt, params, num_heads=H)
    assert jnp.all(jnp.isfinite(logits)), "non-finite logits"
    err = jnp.max(jnp.abs(logits - ref))
    assert jnp.allclose(logits, ref, atol=2e-2, rtol=2e-2), f"mismatch vs reference: {err}"

    print("KERNEL_OK")
</pallas_src>

<mosaic_0001>
module attributes {stable_mosaic.version = 11 : i64} {
  func.func @_encoder_layer_kernel(%arg0: i32, %arg1: memref<1x8x32xf32, #tpu.memory_space<vmem>>, %arg2: memref<1x1x8xf32, #tpu.memory_space<vmem>>, %arg3: memref<32x96xbf16, #tpu.memory_space<vmem>>, %arg4: memref<1x96xf32, #tpu.memory_space<vmem>>, %arg5: memref<32x32xbf16, #tpu.memory_space<vmem>>, %arg6: memref<1x32xf32, #tpu.memory_space<vmem>>, %arg7: memref<1x32xf32, #tpu.memory_space<vmem>>, %arg8: memref<1x32xf32, #tpu.memory_space<vmem>>, %arg9: memref<32x32xbf16, #tpu.memory_space<vmem>>, %arg10: memref<1x32xf32, #tpu.memory_space<vmem>>, %arg11: memref<32x32xbf16, #tpu.memory_space<vmem>>, %arg12: memref<1x32xf32, #tpu.memory_space<vmem>>, %arg13: memref<1x32xf32, #tpu.memory_space<vmem>>, %arg14: memref<1x32xf32, #tpu.memory_space<vmem>>, %arg15: memref<1x8x32xf32, #tpu.memory_space<vmem>>, %arg16: memref<8x32xf32, #tpu.memory_space<vmem>>) attributes {dimension_semantics = [#tpu.dimension_semantics<parallel>], iteration_bounds = array<i64: 2>, scalar_prefetch = 0 : i64, scratch_operands = 1 : i64, tpu.core_type = #tpu.core_type<tc>, window_params = [{transform_indices = @transform_0, window_bounds = array<i64: 1, 8, 32>}, {transform_indices = @transform_1, window_bounds = array<i64: 1, 1, 8>}, {pipeline_mode = #tpu.pipeline_mode<synchronous>, transform_indices = @transform_2, window_bounds = array<i64: 32, 96>}, {pipeline_mode = #tpu.pipeline_mode<synchronous>, transform_indices = @transform_3, window_bounds = array<i64: 1, 96>}, {pipeline_mode = #tpu.pipeline_mode<synchronous>, transform_indices = @transform_4, window_bounds = array<i64: 32, 32>}, {pipeline_mode = #tpu.pipeline_mode<synchronous>, transform_indices = @transform_5, window_bounds = array<i64: 1, 32>}, {pipeline_mode = #tpu.pipeline_mode<synchronous>, transform_indices = @transform_6, window_bounds = array<i64: 1, 32>}, {pipeline_mode = #tpu.pipeline_mode<synchronous>, transform_indices = @transform_7, window_bounds = array<i64: 1, 32>}, {pipeline_mode = #tpu.pipeline_mode<synchronous>, transform_indices = @transform_8, window_bounds = array<i64: 32, 32>}, {pipeline_mode = #tpu.pipeline_mode<synchronous>, transform_indices = @transform_9, window_bounds = array<i64: 1, 32>}, {pipeline_mode = #tpu.pipeline_mode<synchronous>, transform_indices = @transform_10, window_bounds = array<i64: 32, 32>}, {pipeline_mode = #tpu.pipeline_mode<synchronous>, transform_indices = @transform_11, window_bounds = array<i64: 1, 32>}, {pipeline_mode = #tpu.pipeline_mode<synchronous>, transform_indices = @transform_12, window_bounds = array<i64: 1, 32>}, {pipeline_mode = #tpu.pipeline_mode<synchronous>, transform_indices = @transform_13, window_bounds = array<i64: 1, 32>}, {transform_indices = @transform_14, window_bounds = array<i64: 1, 8, 32>}]} {
    %c0 = arith.constant 0 : index
    %c0_0 = arith.constant 0 : index
    %c0_1 = arith.constant 0 : index
    %0 = vector.load %arg1[%c0, %c0_0, %c0_1] : memref<1x8x32xf32, #tpu.memory_space<vmem>>, vector<1x8x32xf32>
    %1 = vector.shape_cast %0 : vector<1x8x32xf32> to vector<8x32xf32>
    %c0_2 = arith.constant 0 : index
    %c0_3 = arith.constant 0 : index
    %2 = vector.load %arg3[%c0_2, %c0_3] : memref<32x96xbf16, #tpu.memory_space<vmem>>, vector<32x96xbf16>
    %3 = arith.truncf %1 : vector<8x32xf32> to vector<8x32xbf16>
    %cst = arith.constant dense<0.000000e+00> : vector<8x96xf32>
    %4 = tpu.matmul %3, %2, %cst {dimension_numbers = #tpu.dot_dimension_numbers<[1], [0], [0], [1], [0, 0, 1, 1], [], []>} : vector<8x32xbf16>, vector<32x96xbf16>, vector<8x96xf32> -> vector<8x96xf32>
    %c0_4 = arith.constant 0 : index
    %c0_5 = arith.constant 0 : index
    %5 = vector.load %arg4[%c0_4, %c0_5] : memref<1x96xf32, #tpu.memory_space<vmem>>, vector<1x96xf32>
    %6 = vector.broadcast %5 : vector<1x96xf32> to vector<8x96xf32>
    %7 = arith.addf %4, %6 : vector<8x96xf32>
    %8 = vector.extract_strided_slice %7 {offsets = [0, 0], sizes = [8, 32], strides = [1, 1]} : vector<8x96xf32> to vector<8x32xf32>
    %cst_6 = arith.constant 0.353553385 : f32
    %9 = vector.broadcast %cst_6 : f32 to vector<8x32xf32>
    %10 = arith.mulf %8, %9 : vector<8x32xf32>
    %11 = vector.extract_strided_slice %7 {offsets = [0, 32], sizes = [8, 32], strides = [1, 1]} : vector<8x96xf32> to vector<8x32xf32>
    %12 = vector.extract_strided_slice %7 {offsets = [0, 64], sizes = [8, 32], strides = [1, 1]} : vector<8x96xf32> to vector<8x32xf32>
    %c0_7 = arith.constant 0 : index
    %c0_8 = arith.constant 0 : index
    %c0_9 = arith.constant 0 : index
    %13 = vector.load %arg2[%c0_7, %c0_8, %c0_9] : memref<1x1x8xf32, #tpu.memory_space<vmem>>, vector<1x1x8xf32>
    %14 = vector.shape_cast %13 : vector<1x1x8xf32> to vector<1x8xf32>
    %15 = arith.truncf %10 : vector<8x32xf32> to vector<8x32xbf16>
    %16 = arith.truncf %11 : vector<8x32xf32> to vector<8x32xbf16>
    %17 = arith.truncf %12 : vector<8x32xf32> to vector<8x32xbf16>
    %18 = vector.extract_strided_slice %15 {offsets = [0, 0], sizes = [8, 8], strides = [1, 1]} : vector<8x32xbf16> to vector<8x8xbf16>
    %19 = vector.extract_strided_slice %16 {offsets = [0, 0], sizes = [8, 8], strides = [1, 1]} : vector<8x32xbf16> to vector<8x8xbf16>
    %cst_10 = arith.constant dense<0.000000e+00> : vector<8x8xf32>
    %20 = tpu.matmul %18, %19, %cst_10 {dimension_numbers = #tpu.dot_dimension_numbers<[1], [1], [0], [0], [0, 0, 1, 0], [], []>} : vector<8x8xbf16>, vector<8x8xbf16>, vector<8x8xf32> -> vector<8x8xf32>
    %21 = vector.broadcast %14 : vector<1x8xf32> to vector<8x8xf32>
    %22 = arith.addf %20, %21 : vector<8x8xf32>
    %cst_11 = arith.constant dense<0xFF800000> : vector<8xf32>
    %23 = vector.multi_reduction <maximumf>, %22, %cst_11 [1] : vector<8x8xf32> to vector<8xf32>
    %24 = vector.shape_cast %23 : vector<8xf32> to vector<8x1xf32>
    %25 = vector.broadcast %24 : vector<8x1xf32> to vector<8x8xf32>
    %26 = arith.subf %22, %25 : vector<8x8xf32>
    %27 = math.exp %26 : vector<8x8xf32>
    %cst_12 = arith.constant dense<0.000000e+00> : vector<8xf32>
    %28 = vector.multi_reduction <add>, %27, %cst_12 [1] : vector<8x8xf32> to vector<8xf32>
    %29 = vector.shape_cast %28 : vector<8xf32> to vector<8x1xf32>
    %30 = tpu.reciprocal %29 {approx = true} : vector<8x1xf32> -> vector<8x1xf32>
    %31 = vector.broadcast %30 : vector<8x1xf32> to vector<8x8xf32>
    %32 = arith.mulf %27, %31 : vector<8x8xf32>
    %33 = arith.truncf %32 : vector<8x8xf32> to vector<8x8xbf16>
    %34 = vector.extract_strided_slice %17 {offsets = [0, 0], sizes = [8, 8], strides = [1, 1]} : vector<8x32xbf16> to vector<8x8xbf16>
    %cst_13 = arith.constant dense<0.000000e+00> : vector<8x8xf32>
    %35 = tpu.matmul %33, %34, %cst_13 {dimension_numbers = #tpu.dot_dimension_numbers<[1], [0], [0], [1], [0, 0, 1, 1], [], []>} : vector<8x8xbf16>, vector<8x8xbf16>, vector<8x8xf32> -> vector<8x8xf32>
    %c0_14 = arith.constant 0 : index
    %c0_15 = arith.constant 0 : index
    %36 = vector.load %arg16[%c0_14, %c0_15] : memref<8x32xf32, #tpu.memory_space<vmem>>, vector<8x8xf32>
    tpu.vector_store %arg16[%c0_14, %c0_15], %35 {strides = array<i32>} : memref<8x32xf32, #tpu.memory_space<vmem>>, vector<8x8xf32>,
    %37 = vector.extract_strided_slice %15 {offsets = [0, 8], sizes = [8, 8], strides = [1, 1]} : vector<8x32xbf16> to vector<8x8xbf16>
    %38 = vector.extract_strided_slice %16 {offsets = [0, 8], sizes = [8, 8], strides = [1, 1]} : vector<8x32xbf16> to vector<8x8xbf16>
    %cst_16 = arith.constant dense<0.000000e+00> : vector<8x8xf32>
    %39 = tpu.matmul %37, %38, %cst_16 {dimension_numbers = #tpu.dot_dimension_numbers<[1], [1], [0], [0], [0, 0, 1, 0], [], []>} : vector<8x8xbf16>, vector<8x8xbf16>, vector<8x8xf32> -> vector<8x8xf32>
    %40 = vector.broadcast %14 : vector<1x8xf32> to vector<8x8xf32>
    %41 = arith.addf %39, %40 : vector<8x8xf32>
    %cst_17 = arith.constant dense<0xFF800000> : vector<8xf32>
    %42 = vector.multi_reduction <maximumf>, %41, %cst_17 [1] : vector<8x8xf32> to vector<8xf32>
    %43 = vector.shape_cast %42 : vector<8xf32> to vector<8x1xf32>
    %44 = vector.broadcast %43 : vector<8x1xf32> to vector<8x8xf32>
    %45 = arith.subf %41, %44 : vector<8x8xf32>
    %46 = math.exp %45 : vector<8x8xf32>
    %cst_18 = arith.constant dense<0.000000e+00> : vector<8xf32>
    %47 = vector.multi_reduction <add>, %46, %cst_18 [1] : vector<8x8xf32> to vector<8xf32>
    %48 = vector.shape_cast %47 : vector<8xf32> to vector<8x1xf32>
    %49 = tpu.reciprocal %48 {approx = true} : vector<8x1xf32> -> vector<8x1xf32>
    %50 = vector.broadcast %49 : vector<8x1xf32> to vector<8x8xf32>
    %51 = arith.mulf %46, %50 : vector<8x8xf32>
    %52 = arith.truncf %51 : vector<8x8xf32> to vector<8x8xbf16>
    %53 = vector.extract_strided_slice %17 {offsets = [0, 8], sizes = [8, 8], strides = [1, 1]} : vector<8x32xbf16> to vector<8x8xbf16>
    %cst_19 = arith.constant dense<0.000000e+00> : vector<8x8xf32>
    %54 = tpu.matmul %52, %53, %cst_19 {dimension_numbers = #tpu.dot_dimension_numbers<[1], [0], [0], [1], [0, 0, 1, 1], [], []>} : vector<8x8xbf16>, vector<8x8xbf16>, vector<8x8xf32> -> vector<8x8xf32>
    %c0_20 = arith.constant 0 : index
    %c8 = arith.constant 8 : index
    %55 = vector.load %arg16[%c0_20, %c8] : memref<8x32xf32, #tpu.memory_space<vmem>>, vector<8x8xf32>
    tpu.vector_store %arg16[%c0_20, %c8], %54 {strides = array<i32>} : memref<8x32xf32, #tpu.memory_space<vmem>>, vector<8x8xf32>,
    %56 = vector.extract_strided_slice %15 {offsets = [0, 16], sizes = [8, 8], strides = [1, 1]} : vector<8x32xbf16> to vector<8x8xbf16>
    %57 = vector.extract_strided_slice %16 {offsets = [0, 16], sizes = [8, 8], strides = [1, 1]} : vector<8x32xbf16> to vector<8x8xbf16>
    %cst_21 = arith.constant dense<0.000000e+00> : vector<8x8xf32>
    %58 = tpu.matmul %56, %57, %cst_21 {dimension_numbers = #tpu.dot_dimension_numbers<[1], [1], [0], [0], [0, 0, 1, 0], [], []>} : vector<8x8xbf16>, vector<8x8xbf16>, vector<8x8xf32> -> vector<8x8xf32>
    %59 = vector.broadcast %14 : vector<1x8xf32> to vector<8x8xf32>
    %60 = arith.addf %58, %59 : vector<8x8xf32>
    %cst_22 = arith.constant dense<0xFF800000> : vector<8xf32>
    %61 = vector.multi_reduction <maximumf>, %60, %cst_22 [1] : vector<8x8xf32> to vector<8xf32>
    %62 = vector.shape_cast %61 : vector<8xf32> to vector<8x1xf32>
    %63 = vector.broadcast %62 : vector<8x1xf32> to vector<8x8xf32>
    %64 = arith.subf %60, %63 : vector<8x8xf32>
    %65 = math.exp %64 : vector<8x8xf32>
    %cst_23 = arith.constant dense<0.000000e+00> : vector<8xf32>
    %66 = vector.multi_reduction <add>, %65, %cst_23 [1] : vector<8x8xf32> to vector<8xf32>
    %67 = vector.shape_cast %66 : vector<8xf32> to vector<8x1xf32>
    %68 = tpu.reciprocal %67 {approx = true} : vector<8x1xf32> -> vector<8x1xf32>
    %69 = vector.broadcast %68 : vector<8x1xf32> to vector<8x8xf32>
    %70 = arith.mulf %65, %69 : vector<8x8xf32>
    %71 = arith.truncf %70 : vector<8x8xf32> to vector<8x8xbf16>
    %72 = vector.extract_strided_slice %17 {offsets = [0, 16], sizes = [8, 8], strides = [1, 1]} : vector<8x32xbf16> to vector<8x8xbf16>
    %cst_24 = arith.constant dense<0.000000e+00> : vector<8x8xf32>
    %73 = tpu.matmul %71, %72, %cst_24 {dimension_numbers = #tpu.dot_dimension_numbers<[1], [0], [0], [1], [0, 0, 1, 1], [], []>} : vector<8x8xbf16>, vector<8x8xbf16>, vector<8x8xf32> -> vector<8x8xf32>
    %c0_25 = arith.constant 0 : index
    %c16 = arith.constant 16 : index
    %74 = vector.load %arg16[%c0_25, %c16] : memref<8x32xf32, #tpu.memory_space<vmem>>, vector<8x8xf32>
    tpu.vector_store %arg16[%c0_25, %c16], %73 {strides = array<i32>} : memref<8x32xf32, #tpu.memory_space<vmem>>, vector<8x8xf32>,
    %75 = vector.extract_strided_slice %15 {offsets = [0, 24], sizes = [8, 8], strides = [1, 1]} : vector<8x32xbf16> to vector<8x8xbf16>
    %76 = vector.extract_strided_slice %16 {offsets = [0, 24], sizes = [8, 8], strides = [1, 1]} : vector<8x32xbf16> to vector<8x8xbf16>
    %cst_26 = arith.constant dense<0.000000e+00> : vector<8x8xf32>
    %77 = tpu.matmul %75, %76, %cst_26 {dimension_numbers = #tpu.dot_dimension_numbers<[1], [1], [0], [0], [0, 0, 1, 0], [], []>} : vector<8x8xbf16>, vector<8x8xbf16>, vector<8x8xf32> -> vector<8x8xf32>
    %78 = vector.broadcast %14 : vector<1x8xf32> to vector<8x8xf32>
    %79 = arith.addf %77, %78 : vector<8x8xf32>
    %cst_27 = arith.constant dense<0xFF800000> : vector<8xf32>
    %80 = vector.multi_reduction <maximumf>, %79, %cst_27 [1] : vector<8x8xf32> to vector<8xf32>
    %81 = vector.shape_cast %80 : vector<8xf32> to vector<8x1xf32>
    %82 = vector.broadcast %81 : vector<8x1xf32> to vector<8x8xf32>
    %83 = arith.subf %79, %82 : vector<8x8xf32>
    %84 = math.exp %83 : vector<8x8xf32>
    %cst_28 = arith.constant dense<0.000000e+00> : vector<8xf32>
    %85 = vector.multi_reduction <add>, %84, %cst_28 [1] : vector<8x8xf32> to vector<8xf32>
    %86 = vector.shape_cast %85 : vector<8xf32> to vector<8x1xf32>
    %87 = tpu.reciprocal %86 {approx = true} : vector<8x1xf32> -> vector<8x1xf32>
    %88 = vector.broadcast %87 : vector<8x1xf32> to vector<8x8xf32>
    %89 = arith.mulf %84, %88 : vector<8x8xf32>
    %90 = arith.truncf %89 : vector<8x8xf32> to vector<8x8xbf16>
    %91 = vector.extract_strided_slice %17 {offsets = [0, 24], sizes = [8, 8], strides = [1, 1]} : vector<8x32xbf16> to vector<8x8xbf16>
    %cst_29 = arith.constant dense<0.000000e+00> : vector<8x8xf32>
    %92 = tpu.matmul %90, %91, %cst_29 {dimension_numbers = #tpu.dot_dimension_numbers<[1], [0], [0], [1], [0, 0, 1, 1], [], []>} : vector<8x8xbf16>, vector<8x8xbf16>, vector<8x8xf32> -> vector<8x8xf32>
    %c0_30 = arith.constant 0 : index
    %c24 = arith.constant 24 : index
    %93 = vector.load %arg16[%c0_30, %c24] : memref<8x32xf32, #tpu.memory_space<vmem>>, vector<8x8xf32>
    tpu.vector_store %arg16[%c0_30, %c24], %92 {strides = array<i32>} : memref<8x32xf32, #tpu.memory_space<vmem>>, vector<8x8xf32>,
    %c0_31 = arith.constant 0 : index
    %c0_32 = arith.constant 0 : index
    %94 = vector.load %arg16[%c0_31, %c0_32] : memref<8x32xf32, #tpu.memory_space<vmem>>, vector<8x32xf32>
    %c0_33 = arith.constant 0 : index
    %c0_34 = arith.constant 0 : index
    %95 = vector.load %arg5[%c0_33, %c0_34] : memref<32x32xbf16, #tpu.memory_space<vmem>>, vector<32x32xbf16>
    %96 = arith.truncf %94 : vector<8x32xf32> to vector<8x32xbf16>
    %cst_35 = arith.constant dense<0.000000e+00> : vector<8x32xf32>
    %97 = tpu.matmul %96, %95, %cst_35 {dimension_numbers = #tpu.dot_dimension_numbers<[1], [0], [0], [1], [0, 0, 1, 1], [], []>} : vector<8x32xbf16>, vector<32x32xbf16>, vector<8x32xf32> -> vector<8x32xf32>
    %c0_36 = arith.constant 0 : index
    %c0_37 = arith.constant 0 : index
    %98 = vector.load %arg6[%c0_36, %c0_37] : memref<1x32xf32, #tpu.memory_space<vmem>>, vector<1x32xf32>
    %99 = vector.broadcast %98 : vector<1x32xf32> to vector<8x32xf32>
    %100 = arith.addf %97, %99 : vector<8x32xf32>
    %101 = arith.addf %1, %100 : vector<8x32xf32>
    %c0_38 = arith.constant 0 : index
    %c0_39 = arith.constant 0 : index
    %102 = vector.load %arg7[%c0_38, %c0_39] : memref<1x32xf32, #tpu.memory_space<vmem>>, vector<1x32xf32>
    %c0_40 = arith.constant 0 : index
    %c0_41 = arith.constant 0 : index
    %103 = vector.load %arg8[%c0_40, %c0_41] : memref<1x32xf32, #tpu.memory_space<vmem>>, vector<1x32xf32>
    %cst_42 = arith.constant dense<0.000000e+00> : vector<8xf32>
    %104 = vector.multi_reduction <add>, %101, %cst_42 [1] : vector<8x32xf32> to vector<8xf32>
    %105 = vector.shape_cast %104 : vector<8xf32> to vector<8x1xf32>
    %cst_43 = arith.constant 3.200000e+01 : f32
    %106 = vector.broadcast %cst_43 : f32 to vector<8x1xf32>
    %107 = arith.divf %105, %106 : vector<8x1xf32>
    %108 = vector.broadcast %107 : vector<8x1xf32> to vector<8x32xf32>
    %109 = arith.subf %101, %108 : vector<8x32xf32>
    %110 = arith.mulf %109, %109 : vector<8x32xf32>
    %cst_44 = arith.constant dense<0.000000e+00> : vector<8xf32>
    %111 = vector.multi_reduction <add>, %110, %cst_44 [1] : vector<8x32xf32> to vector<8xf32>
    %112 = vector.shape_cast %111 : vector<8xf32> to vector<8x1xf32>
    %cst_45 = arith.constant 3.200000e+01 : f32
    %113 = vector.broadcast %cst_45 : f32 to vector<8x1xf32>
    %114 = arith.divf %112, %113 : vector<8x1xf32>
    %cst_46 = arith.constant 9.99999974E-6 : f32
    %115 = vector.broadcast %cst_46 : f32 to vector<8x1xf32>
    %116 = arith.addf %114, %115 : vector<8x1xf32>
    %117 = math.rsqrt %116 : vector<8x1xf32>
    %118 = vector.broadcast %117 : vector<8x1xf32> to vector<8x32xf32>
    %119 = arith.mulf %109, %118 : vector<8x32xf32>
    %120 = vector.broadcast %102 : vector<1x32xf32> to vector<8x32xf32>
    %121 = arith.mulf %119, %120 : vector<8x32xf32>
    %122 = vector.broadcast %103 : vector<1x32xf32> to vector<8x32xf32>
    %123 = arith.addf %121, %122 : vector<8x32xf32>
    %c0_47 = arith.constant 0 : index
    %c0_48 = arith.constant 0 : index
    %124 = vector.load %arg9[%c0_47, %c0_48] : memref<32x32xbf16, #tpu.memory_space<vmem>>, vector<32x32xbf16>
    %125 = arith.truncf %123 : vector<8x32xf32> to vector<8x32xbf16>
    %cst_49 = arith.constant dense<0.000000e+00> : vector<8x32xf32>
    %126 = tpu.matmul %125, %124, %cst_49 {dimension_numbers = #tpu.dot_dimension_numbers<[1], [0], [0], [1], [0, 0, 1, 1], [], []>} : vector<8x32xbf16>, vector<32x32xbf16>, vector<8x32xf32> -> vector<8x32xf32>
    %c0_50 = arith.constant 0 : index
    %c0_51 = arith.constant 0 : index
    %127 = vector.load %arg10[%c0_50, %c0_51] : memref<1x32xf32, #tpu.memory_space<vmem>>, vector<1x32xf32>
    %128 = vector.broadcast %127 : vector<1x32xf32> to vector<8x32xf32>
    %129 = arith.addf %126, %128 : vector<8x32xf32>
    %cst_52 = arith.constant 5.000000e-01 : f32
    %130 = vector.broadcast %cst_52 : f32 to vector<8x32xf32>
    %131 = arith.mulf %130, %129 : vector<8x32xf32>
    %cst_53 = arith.constant 0.707106769 : f32
    %132 = vector.broadcast %cst_53 : f32 to vector<8x32xf32>
    %133 = arith.mulf %129, %132 : vector<8x32xf32>
    %134 = math.absf %133 : vector<8x32xf32>
    %cst_54 = arith.constant 0.327591091 : f32
    %135 = vector.broadcast %cst_54 : f32 to vector<8x32xf32>
    %136 = arith.mulf %135, %134 : vector<8x32xf32>
    %cst_55 = arith.constant 1.000000e+00 : f32
    %137 = vector.broadcast %cst_55 : f32 to vector<8x32xf32>
    %138 = arith.addf %137, %136 : vector<8x32xf32>
    %cst_56 = arith.constant 1.000000e+00 : f32
    %139 = vector.broadcast %cst_56 : f32 to vector<8x32xf32>
    %140 = arith.divf %139, %138 : vector<8x32xf32>
    %cst_57 = arith.constant 1.06140542 : f32
    %141 = vector.broadcast %cst_57 : f32 to vector<8x32xf32>
    %142 = arith.mulf %140, %141 : vector<8x32xf32>
    %cst_58 = arith.constant -1.45315206 : f32
    %143 = vector.broadcast %cst_58 : f32 to vector<8x32xf32>
    %144 = arith.addf %143, %142 : vector<8x32xf32>
    %145 = arith.mulf %140, %144 : vector<8x32xf32>
    %cst_59 = arith.constant 1.42141378 : f32
    %146 = vector.broadcast %cst_59 : f32 to vector<8x32xf32>
    %147 = arith.addf %146, %145 : vector<8x32xf32>
    %148 = arith.mulf %140, %147 : vector<8x32xf32>
    %cst_60 = arith.constant -0.284496725 : f32
    %149 = vector.broadcast %cst_60 : f32 to vector<8x32xf32>
    %150 = arith.addf %149, %148 : vector<8x32xf32>
    %151 = arith.mulf %140, %150 : vector<8x32xf32>
    %cst_61 = arith.constant 0.254829586 : f32
    %152 = vector.broadcast %cst_61 : f32 to vector<8x32xf32>
    %153 = arith.addf %152, %151 : vector<8x32xf32>
    %154 = arith.mulf %140, %153 : vector<8x32xf32>
    %cst_62 = arith.constant 0.000000e+00 : f32
    %155 = vector.broadcast %cst_62 : f32 to vector<8x32xf32>
    %156 = arith.subf %155, %134 : vector<8x32xf32>
    %157 = arith.mulf %156, %134 : vector<8x32xf32>
    %158 = math.exp %157 : vector<8x32xf32>
    %159 = arith.mulf %154, %158 : vector<8x32xf32>
    %cst_63 = arith.constant 1.000000e+00 : f32
    %160 = vector.broadcast %cst_63 : f32 to vector<8x32xf32>
    %161 = arith.subf %160, %159 : vector<8x32xf32>
    %cst_64 = arith.constant 0.000000e+00 : f32
    %162 = vector.broadcast %cst_64 : f32 to vector<8x32xf32>
    %163 = arith.cmpf olt, %133, %162 : vector<8x32xf32>
    %cst_65 = arith.constant 0.000000e+00 : f32
    %164 = vector.broadcast %cst_65 : f32 to vector<8x32xf32>
    %165 = arith.subf %164, %161 : vector<8x32xf32>
    %166 = arith.select %163, %165, %161 : vector<8x32xi1>, vector<8x32xf32>
    %cst_66 = arith.constant 1.000000e+00 : f32
    %167 = vector.broadcast %cst_66 : f32 to vector<8x32xf32>
    %168 = arith.addf %167, %166 : vector<8x32xf32>
    %169 = arith.mulf %131, %168 : vector<8x32xf32>
    %c0_67 = arith.constant 0 : index
    %c0_68 = arith.constant 0 : index
    %170 = vector.load %arg11[%c0_67, %c0_68] : memref<32x32xbf16, #tpu.memory_space<vmem>>, vector<32x32xbf16>
    %171 = arith.truncf %169 : vector<8x32xf32> to vector<8x32xbf16>
    %cst_69 = arith.constant dense<0.000000e+00> : vector<8x32xf32>
    %172 = tpu.matmul %171, %170, %cst_69 {dimension_numbers = #tpu.dot_dimension_numbers<[1], [0], [0], [1], [0, 0, 1, 1], [], []>} : vector<8x32xbf16>, vector<32x32xbf16>, vector<8x32xf32> -> vector<8x32xf32>
    %c0_70 = arith.constant 0 : index
    %c0_71 = arith.constant 0 : index
    %173 = vector.load %arg12[%c0_70, %c0_71] : memref<1x32xf32, #tpu.memory_space<vmem>>, vector<1x32xf32>
    %174 = vector.broadcast %173 : vector<1x32xf32> to vector<8x32xf32>
    %175 = arith.addf %172, %174 : vector<8x32xf32>
    %176 = arith.addf %123, %175 : vector<8x32xf32>
    %c0_72 = arith.constant 0 : index
    %c0_73 = arith.constant 0 : index
    %177 = vector.load %arg13[%c0_72, %c0_73] : memref<1x32xf32, #tpu.memory_space<vmem>>, vector<1x32xf32>
    %c0_74 = arith.constant 0 : index
    %c0_75 = arith.constant 0 : index
    %178 = vector.load %arg14[%c0_74, %c0_75] : memref<1x32xf32, #tpu.memory_space<vmem>>, vector<1x32xf32>
    %cst_76 = arith.constant dense<0.000000e+00> : vector<8xf32>
    %179 = vector.multi_reduction <add>, %176, %cst_76 [1] : vector<8x32xf32> to vector<8xf32>
    %180 = vector.shape_cast %179 : vector<8xf32> to vector<8x1xf32>
    %cst_77 = arith.constant 3.200000e+01 : f32
    %181 = vector.broadcast %cst_77 : f32 to vector<8x1xf32>
    %182 = arith.divf %180, %181 : vector<8x1xf32>
    %183 = vector.broadcast %182 : vector<8x1xf32> to vector<8x32xf32>
    %184 = arith.subf %176, %183 : vector<8x32xf32>
    %185 = arith.mulf %184, %184 : vector<8x32xf32>
    %cst_78 = arith.constant dense<0.000000e+00> : vector<8xf32>
    %186 = vector.multi_reduction <add>, %185, %cst_78 [1] : vector<8x32xf32> to vector<8xf32>
    %187 = vector.shape_cast %186 : vector<8xf32> to vector<8x1xf32>
    %cst_79 = arith.constant 3.200000e+01 : f32
    %188 = vector.broadcast %cst_79 : f32 to vector<8x1xf32>
    %189 = arith.divf %187, %188 : vector<8x1xf32>
    %cst_80 = arith.constant 9.99999974E-6 : f32
    %190 = vector.broadcast %cst_80 : f32 to vector<8x1xf32>
    %191 = arith.addf %189, %190 : vector<8x1xf32>
    %192 = math.rsqrt %191 : vector<8x1xf32>
    %193 = vector.broadcast %192 : vector<8x1xf32> to vector<8x32xf32>
    %194 = arith.mulf %184, %193 : vector<8x32xf32>
    %195 = vector.broadcast %177 : vector<1x32xf32> to vector<8x32xf32>
    %196 = arith.mulf %194, %195 : vector<8x32xf32>
    %197 = vector.broadcast %178 : vector<1x32xf32> to vector<8x32xf32>
    %198 = arith.addf %196, %197 : vector<8x32xf32>
    %c0_81 = arith.constant 0 : index
    %c0_82 = arith.constant 0 : index
    %c0_83 = arith.constant 0 : index
    %199 = vector.load %arg15[%c0_81, %c0_82, %c0_83] : memref<1x8x32xf32, #tpu.memory_space<vmem>>, vector<1x8x32xf32>
    %200 = vector.shape_cast %199 : vector<1x8x32xf32> to vector<8x32xf32>
    %201 = vector.shape_cast %198 : vector<8x32xf32> to vector<1x8x32xf32>
    tpu.vector_store %arg15[%c0_81, %c0_82, %c0_83], %201 {strides = array<i32>} : memref<1x8x32xf32, #tpu.memory_space<vmem>>, vector<1x8x32xf32>,
    return
  }
  func.func @transform_0(%arg0: i32) -> (i32, i32, i32) {
    %c0_i32 = arith.constant 0 : i32
    %c0_i32_0 = arith.constant 0 : i32
    %c0_i32_1 = arith.constant 0 : i32
    return %arg0, %c0_i32, %c0_i32_0 : i32, i32, i32
  }
  func.func @transform_1(%arg0: i32) -> (i32, i32, i32) {
    %c0_i32 = arith.constant 0 : i32
    %c0_i32_0 = arith.constant 0 : i32
    %c0_i32_1 = arith.constant 0 : i32
    return %arg0, %c0_i32, %c0_i32_0 : i32, i32, i32
  }
  func.func @transform_2(%arg0: i32) -> (i32, i32) {
    %c0_i32 = arith.constant 0 : i32
    %c0_i32_0 = arith.constant 0 : i32
    %c0_i32_1 = arith.constant 0 : i32
    return %c0_i32, %c0_i32_0 : i32, i32
  }
  func.func @transform_3(%arg0: i32) -> (i32, i32) {
    %c0_i32 = arith.constant 0 : i32
    %c0_i32_0 = arith.constant 0 : i32
    %c0_i32_1 = arith.constant 0 : i32
    return %c0_i32, %c0_i32_0 : i32, i32
  }
  func.func @transform_4(%arg0: i32) -> (i32, i32) {
    %c0_i32 = arith.constant 0 : i32
    %c0_i32_0 = arith.constant 0 : i32
    %c0_i32_1 = arith.constant 0 : i32
    return %c0_i32, %c0_i32_0 : i32, i32
  }
  func.func @transform_5(%arg0: i32) -> (i32, i32) {
    %c0_i32 = arith.constant 0 : i32
    %c0_i32_0 = arith.constant 0 : i32
    %c0_i32_1 = arith.constant 0 : i32
    return %c0_i32, %c0_i32_0 : i32, i32
  }
  func.func @transform_6(%arg0: i32) -> (i32, i32) {
    %c0_i32 = arith.constant 0 : i32
    %c0_i32_0 = arith.constant 0 : i32
    %c0_i32_1 = arith.constant 0 : i32
    return %c0_i32, %c0_i32_0 : i32, i32
  }
  func.func @transform_7(%arg0: i32) -> (i32, i32) {
    %c0_i32 = arith.constant 0 : i32
    %c0_i32_0 = arith.constant 0 : i32
    %c0_i32_1 = arith.constant 0 : i32
    return %c0_i32, %c0_i32_0 : i32, i32
  }
  func.func @transform_8(%arg0: i32) -> (i32, i32) {
    %c0_i32 = arith.constant 0 : i32
    %c0_i32_0 = arith.constant 0 : i32
    %c0_i32_1 = arith.constant 0 : i32
    return %c0_i32, %c0_i32_0 : i32, i32
  }
  func.func @transform_9(%arg0: i32) -> (i32, i32) {
    %c0_i32 = arith.constant 0 : i32
    %c0_i32_0 = arith.constant 0 : i32
    %c0_i32_1 = arith.constant 0 : i32
    return %c0_i32, %c0_i32_0 : i32, i32
  }
  func.func @transform_10(%arg0: i32) -> (i32, i32) {
    %c0_i32 = arith.constant 0 : i32
    %c0_i32_0 = arith.constant 0 : i32
    %c0_i32_1 = arith.constant 0 : i32
    return %c0_i32, %c0_i32_0 : i32, i32
  }
  func.func @transform_11(%arg0: i32) -> (i32, i32) {
    %c0_i32 = arith.constant 0 : i32
    %c0_i32_0 = arith.constant 0 : i32
    %c0_i32_1 = arith.constant 0 : i32
    return %c0_i32, %c0_i32_0 : i32, i32
  }
  func.func @transform_12(%arg0: i32) -> (i32, i32) {
    %c0_i32 = arith.constant 0 : i32
    %c0_i32_0 = arith.constant 0 : i32
    %c0_i32_1 = arith.constant 0 : i32
    return %c0_i32, %c0_i32_0 : i32, i32
  }
  func.func @transform_13(%arg0: i32) -> (i32, i32) {
    %c0_i32 = arith.constant 0 : i32
    %c0_i32_0 = arith.constant 0 : i32
    %c0_i32_1 = arith.constant 0 : i32
    return %c0_i32, %c0_i32_0 : i32, i32
  }
  func.func @transform_14(%arg0: i32) -> (i32, i32, i32) {
    %c0_i32 = arith.constant 0 : i32
    %c0_i32_0 = arith.constant 0 : i32
    %c0_i32_1 = arith.constant 0 : i32
    return %arg0, %c0_i32, %c0_i32_0 : i32, i32, i32
  }
}

</mosaic_0001>

<bundles_post_ra>
// kernel: tpu_custom_call.1
= control target key start
LH: loop header
LB: loop body
LE: loop exit
PB: predicated region body
PF: predicated region fallthrough
CT: control target
= control target key end

     0   :  { %s2710_s0 = inlined_call_operand.hbm [shape: f32[2,8,32], index: 0, kind: input, shape index: {}]   ;;  %s2711_s1 = inlined_call_operand.hbm [shape: f32[2,1,8], index: 1, kind: input, shape index: {}]   ;;  %s2712_s2 = inlined_call_operand.hbm [shape: bf16[32,96], index: 2, kind: input, shape index: {}]   ;;  %s2713_s3 = inlined_call_operand.vmem [shape: f32[1,96], index: 3, kind: input, shape index: {}]   ;;  %s2714_s4 = inlined_call_operand.hbm [shape: bf16[32,32], index: 4, kind: input, shape index: {}]   ;;  %s2715_s5 = inlined_call_operand.vmem [shape: f32[1,32], index: 5, kind: input, shape index: {}]   ;;  %s2716_s6 = inlined_call_operand.hbm [shape: f32[1,32], index: 6, kind: input, shape index: {}]   ;;  %s2717_s7 = inlined_call_operand.hbm [shape: f32[1,32], index: 7, kind: input, shape index: {}]   ;;  %s2718_s8 = inlined_call_operand.hbm [shape: bf16[32,32], index: 8, kind: input, shape index: {}]   ;;  %s2719_s9 = inlined_call_operand.hbm [shape: f32[1,32], index: 9, kind: input, shape index: {}]   ;;  %s2720_s10 = inlined_call_operand.vmem [shape: bf16[32,32], index: 10, kind: input, shape index: {}]   ;;  %s2721_s11 = inlined_call_operand.vmem [shape: f32[1,32], index: 11, kind: input, shape index: {}]   ;;  %s2722_s12 = inlined_call_operand.vmem [shape: f32[1,32], index: 12, kind: input, shape index: {}]   ;;  %s2723_s13 = inlined_call_operand.vmem [shape: f32[1,32], index: 13, kind: input, shape index: {}]   ;;  %s2724_s14 = inlined_call_operand.hbm [shape: f32[2,8,32], index: 14, kind: output, shape index: {}]  }
   0x1   :  { %2735 = sst [smem:[#allocation28_spill]] %s2710_s0 }
   0x2   :  { %2736 = sst [smem:[#allocation29_spill]] %s2712_s2 }
   0x3   :  { %2737 = sst [smem:[#allocation30_spill]] %s2714_s4 }
   0x4   :  { %2738 = sst [smem:[#allocation31_spill]] %s2716_s6 }
   0x5   :  { %2739 = sst [smem:[#allocation32_spill]] %s2717_s7 }
   0x6   :  { %2740 = sst [smem:[#allocation33_spill]] %s2718_s8 }
   0x7   :  { %2741 = sst [smem:[#allocation34_spill]] %s2719_s9 }
   0x8   :  { %2742 = sst [smem:[#allocation35_spill]] %s2724_s14 }
   0x9   :  { %19 = vsyncpa [#allocation4], 0 }
   0xa   :  { %21 = vsyncpa [#allocation4 + $0x1], 0 }
   0xb   :  { %22 = vsyncpa [#allocation7], 0 }
   0xc   :  { %24 = vsyncpa [#allocation7 + $0x1], 0 }
   0xd   :  { %25 = vsyncpa [#allocation10], 0 }
   0xe   :  { %26 = vsyncpa [#allocation13], 0 }
   0xf   :  { %27 = vsyncpa [#allocation16], 0 }
  0x10   :  { %28 = vsyncpa [#allocation5], 0 }
  0x11   :  { %30 = vsyncpa [#allocation5 + $0x1], 0  ;;  %s2315_s29 = smov 0   ;;  %s2317_s30 = smov 0  }
  0x12   :  { %s2319_s15 = smov 0   ;;  %s2321_s16 = smov 0  }
  0x13 LB: > { %2743 = sst [smem:[#allocation25_spill]] %s2207_s15  ;;  %s2213_s17 = smov [#allocation8]   ;;  %s2211_s16 = sphi %s2321_s16, %s2779_s16   ;;  %s2207_s15 = sphi %s2319_s15, %s2781_s15   ;;  %s2203_s30 = sphi %s2317_s30, %s2783_s30   ;;  %s2199_s29 = sphi %s2315_s29, %s2782_s29  }
  0x14   : > { %s383_s18 = sshll.u32 %s2213_s17, 4  ;;  %s2336_s19 = sadd.s32 4294967295, %s2211_s16   ;;  %s384_s18 = int_to_ptr.vmem [resolvable:$true] %s383_s18 }
  0x15   : > { %p1592_p0 = scmp.ge.s32.totalorder %s2211_s16, 1  ;;  %p2728_p1 = scmp.eq.s32.totalorder %s2336_s19, 0 }
  0x16   : > { %p371_p2 = scmp.lt.s32.totalorder %s2211_s16, 3  ;;  %s2214_s21 = smov [#allocation9]  }
  0x17   : > { %s399_s22 = sshll.u32 %s2214_s21, 4  ;;  %s2215_s24 = smov [#allocation12]   ;;  %s2354_s22 = int_to_ptr.vmem [resolvable:$true] %s399_s22 }
  0x18   : > { %p2341_p3 = pnand %p1592_p0, %p371_p2  ;;  %s427_s25 = sshll.u32 %s2215_s24, 4  ;;  %s2356_s25 = int_to_ptr.vmem [resolvable:$true] %s427_s25 }
  0x19   : > { %s1926_s27 = scalar_lea.vmem %s384_s18, 256  ;;  %p1934_p11 = scmp.lt.s32.totalorder %s384_s18, %s384_s18 }
  0x1a   : > { %s2744_s20 = scalar_select %p2341_p3, 1, 0 }
  0x1b   : > { %p1783_p5 = pneg %p2341_p3  ;;  %p1927_p8 = scmp.ne.s32.totalorder %s384_s18, %s1926_s27 }
  0x1c   : > { %p1935_p12 = scmp.lt.s32.totalorder %s1926_s27, %s1926_s27 }
  0x1d   : > { %p2350_p6 = pnand %p1783_p5, %p2728_p1 }
  0x1e   : > { %p1936_p13 = por %p1935_p12, %p1934_p11 }
  0x1f   : > { %p2360_p7 = pneg %p2350_p6 }
  0x21   : > { %p1929_p9 = pnand %p1927_p8, %p2360_p7 }
  0x23   : > { %p1930_p10 = pneg %p1929_p9 }
  0x25   : > { %p1937_p0 = pnand %p1936_p13, %p1930_p10 }
  0x27   : > { %1940 = shalt.err (!%p1937_p0)
}
  0x28   : > { %s2726_s28 = smov 64   ;;  %s2727_s17 = smov 4  }
  0x29   : > { %s2747_s2 = sld [smem:[#allocation29_spill]]  ;;  %s1952_s14 = scalar_lea.vmem %s2354_s22, 256 }
  0x2a   : > { %p1953_p2 = scmp.ne.s32.totalorder %s2354_s22, %s1952_s14  ;;  %p1960_p9 = scmp.lt.s32.totalorder %s2354_s22, %s2354_s22 }
  0x2b   : > { %p1961_p10 = scmp.lt.s32.totalorder %s1952_s14, %s1952_s14 }
  0x2c   : > { %p1955_p5 = pnand %p1953_p2, %p2360_p7 }
  0x2d   : > { %p1962_p11 = por %p1961_p10, %p1960_p9 }
  0x2e   : > { %p1956_p8 = pneg %p1955_p5 }
  0x2f   : > { %1786 = dma.hbm_to_vmem [thread:$0]  (!%p2350_p6), %s2747_s2, 256, %s384_s18, [#allocation7], %s2726_s28, %s2726_s28, %s2727_s17  }
  0x30   : > { %p1963_p12 = pnand %p1962_p11, %p1956_p8 }
  0x32   : > { %1966 = shalt.err (!%p1963_p12)
}
  0x33   : > { %s2748_s4 = sld [smem:[#allocation30_spill]]  ;;  %s1978_s18 = scalar_lea.vmem %s2356_s25, 16 }
  0x34   : > { %p1979_p13 = scmp.ne.s32.totalorder %s2356_s25, %s1978_s18  ;;  %s1985_s14 = scalar_lea.vmem %s2356_s25, 32 }
  0x35   : > { %p1986_p5 = scmp.lt.s32.totalorder %s2356_s25, %s2356_s25  ;;  %p1987_p8 = scmp.lt.s32.totalorder %s1985_s14, %s1978_s18 }
  0x36   : > { %p1981_p0 = pnand %p1979_p13, %p2360_p7 }
  0x37   : > { %p1988_p9 = por %p1987_p8, %p1986_p5 }
  0x38   : > { %p1982_p2 = pneg %p1981_p0 }
  0x39   : > { %1789 = dma.hbm_to_vmem [thread:$0]  (!%p2350_p6), %s2748_s4, 256, %s2354_s22, [#allocation10], %s2726_s28, %s2726_s28, %s2727_s17  }
  0x3a   : > { %p1989_p10 = pnand %p1988_p9, %p1982_p2 }
  0x3c   : > { %1992 = shalt.err (!%p1989_p10)
}
  0x3d   : > { %s2749_s7 = sld [smem:[#allocation32_spill]]  ;;  %s2218_s22 = smov [#allocation11]  }
  0x3e   : > { %s416_s21 = sshll.u32 %s2218_s22, 4  ;;  %s2219_s28 = smov [#allocation14]   ;;  %s417_s21 = int_to_ptr.vmem [resolvable:$true] %s416_s21 }
  0x3f   : > { %s437_s17 = sshll.u32 %s2219_s28, 4  ;;  %s2004_s2 = scalar_lea.vmem %s417_s21, 16  ;;  %s438_s17 = int_to_ptr.vmem [resolvable:$true] %s437_s17 }
  0x40   : > { %p2005_p11 = scmp.ne.s32.totalorder %s417_s21, %s2004_s2  ;;  %s2011_s18 = scalar_lea.vmem %s417_s21, 32 }
  0x41   : > { %p2012_p0 = scmp.lt.s32.totalorder %s417_s21, %s417_s21  ;;  %p2013_p2 = scmp.lt.s32.totalorder %s2011_s18, %s2004_s2 }
  0x42   : > { %p2007_p12 = pnand %p2005_p11, %p2360_p7 }
  0x43   : > { %1795 = dma.hbm_to_vmem [thread:$0]  (!%p2350_p6), %s2749_s7, 16, %s2356_s25, [#allocation13]  }
  0x44   : > { %p2008_p13 = pneg %p2007_p12  ;;  %p2014_p5 = por %p2013_p2, %p2012_p0 }
  0x46   : > { %p2015_p8 = pnand %p2014_p5, %p2008_p13 }
  0x48   : > { %2018 = shalt.err (!%p2015_p8)
}
  0x49   : > { %s2750_s6 = sld [smem:[#allocation31_spill]]  ;;  %s2030_s28 = scalar_lea.vmem %s438_s17, 256 }
  0x4a   : > { %p2031_p9 = scmp.ne.s32.totalorder %s438_s17, %s2030_s28  ;;  %p2038_p12 = scmp.lt.s32.totalorder %s438_s17, %s438_s17 }
  0x4b   : > { %p2039_p4 = scmp.lt.s32.totalorder %s2030_s28, %s2030_s28 }
  0x4c   : > { %p2033_p10 = pnand %p2031_p9, %p2360_p7 }
  0x4d   : > { %p2040_p1 = por %p2039_p4, %p2038_p12 }
  0x4e   : > { %p2034_p11 = pneg %p2033_p10 }
  0x4f   : > { %1792 = dma.hbm_to_vmem [thread:$0]  (!%p2350_p6), %s2750_s6, 16, %s417_s21, [#allocation10]  }
  0x50   : > { %p2041_p3 = pnand %p2040_p1, %p2034_p11 }
  0x52   : > { %2044 = shalt.err (!%p2041_p3)
}
  0x53   : > { %s2751_s2 = smov 4   ;;  %s2752_s24 = smov 64  }
  0x54   : > { %s2753_s8 = sld [smem:[#allocation33_spill]]  ;;  %s2220_s21 = smov [#allocation15]  }
  0x55   : > { %s451_s18 = sshll.u32 %s2220_s21, 4  ;;  %s452_s18 = int_to_ptr.vmem [resolvable:$true] %s451_s18 }
  0x56   : > { %s2056_s14 = scalar_lea.vmem %s452_s18, 16  ;;  %s2063_s25 = scalar_lea.vmem %s452_s18, 32 }
  0x57   : > { %p2057_p13 = scmp.ne.s32.totalorder %s452_s18, %s2056_s14  ;;  %p2064_p1 = scmp.lt.s32.totalorder %s452_s18, %s452_s18 }
  0x58   : > { %p2065_p3 = scmp.lt.s32.totalorder %s2063_s25, %s2056_s14 }
  0x59   : > { %p2059_p0 = pnand %p2057_p13, %p2360_p7 }
  0x5a   : > { %1798 = dma.hbm_to_vmem [thread:$0]  (!%p2350_p6), %s2753_s8, 256, %s438_s17, [#allocation13], %s2752_s24, %s2752_s24, %s2751_s2  }
  0x5b   : > { %p2060_p4 = pneg %p2059_p0  ;;  %p2066_p2 = por %p2065_p3, %p2064_p1 }
  0x5d   : > { %p2067_p5 = pnand %p2066_p2, %p2060_p4 }
  0x5f   : > { %2070 = shalt.err (!%p2067_p5)
}
  0x60   : > { %s2754_s9 = sld [smem:[#allocation34_spill]]  ;;  %s1591_s26 = sadd.s32 4294967294, %s2211_s16  }
  0x61   : > { %s2428_s23 = sadd.s32 1, %s2211_s16   ;;  %s43_s2 = sadd.s32 1, %s2207_s15 }
  0x62   : > { %2755 = sst [smem:[#allocation26_spill]] %s2428_s23  ;;  %s40_s17 = ssub.s32 %s2211_s16, %s2428_s23 }
  0x63   : > { %p41_p7 = scmp.eq.s32.totalorder %s40_s17, 0  ;;  %p50_p8 = scmp.ne.s32.totalorder %s2207_s15, %s2203_s30 }
  0x64   : > { %p51_p9 = scmp.eq.s32.totalorder %s2211_s16, 0  ;;  %p56_p10 = scmp.ne.s32.totalorder %s2203_s30, %s2199_s29 }
  0x65   : > { %s2439_s24 = scalar_select %p41_p7, %s2207_s15, %s43_s2  }
  0x66   : > { %1801 = dma.hbm_to_vmem [thread:$0]  (!%p2350_p6), %s2754_s9, 16, %s452_s18, [#allocation16]  }
  0x67   : > { %2756 = sst [smem:[#allocation27_spill]] %s2439_s24  ;;  %p2441_p11 = por %p51_p9, %p50_p8 }
  0x68   : > { %p2758_p12 = scmp.eq.s32.totalorder %s2336_s19, 0  ;;  %p358_p13 = scmp.eq.s32.totalorder %s2336_s19, 1 }
  0x69   : > { %p364_p0 = scmp.eq.s32.totalorder %s1591_s26, 1  ;;  %p1819_p4 = scmp.lt.s32.totalorder %s2211_s16, 2 }
  0x6a   : > { %p2447_p6 = por %p2758_p12, %p56_p10  ;;  %s2454_s18 = sand.u32 1, %s2207_s15  }
  0x6b   : > { %p2456_p1 = por %p358_p13, %p50_p8  ;;  %p2460_p3 = por %p364_p0, %p56_p10 }
  0x6c   : > { %s2759_s21 = scalar_select %p2447_p6, 1, 0 }
  0x6d   : > { %s2760_s14 = scalar_select %p2456_p1, 1, 0 }
  0x6e   : > { %s2761_s25 = scalar_select %p2460_p3, 1, 0 }
  0x6f   : > { %s1600_s28 = sshll.u32 %s2454_s18, 3  ;;  %s1601_s27 = sshll.u32 %s2211_s16, 7 }
  0x70   : > { %s2762_s0 = sld [smem:[#allocation28_spill]]  ;;  %s478_s26 = scalar_lea.vmem [#allocation3], %s1600_s28 }
  0x71   : > { %s485_s6 = sshll.u32 %s478_s26, 4  ;;  %p2475_p2 = pnand %p1819_p4, %p2441_p11  ;;  %s2471_s6 = int_to_ptr.vmem [resolvable:$true] %s485_s6 }
  0x72   : > { %s475_s9 = scalar_lea.sflag [#allocation4], %s2454_s18 }
  0x73   : > { %p2073_p7 = pneg %p2475_p2 }
  0x76   : > { %s2469_s4 = scalar_lea.hbm %s2762_s0, %s1601_s27  ;;  %s2076_s22 = scalar_lea.hbm %s2762_s0, 256 }
  0x77   : > { %s2071_s24 = scalar_lea.hbm %s2469_s4, 128  ;;  %p2077_p10 = scmp.lt.s32.totalorder %s2469_s4, %s2762_s0 }
  0x78   : > { %p2072_p5 = scmp.ne.s32.totalorder %s2469_s4, %s2071_s24  ;;  %p2078_p11 = scmp.lt.s32.totalorder %s2076_s22, %s2071_s24 }
  0x7a   : > { %p2074_p8 = pnand %p2073_p7, %p2072_p5  ;;  %p2079_p12 = por %p2078_p11, %p2077_p10 }
  0x7c   : > { %p2075_p9 = pneg %p2074_p8 }
  0x7e   : > { %p2080_p13 = pnand %p2079_p12, %p2075_p9 }
  0x80   : > { %2083 = shalt.err (!%p2080_p13)
}
  0x81   : > { %s2084_s26 = scalar_lea.vmem %s2471_s6, 128  ;;  %s2221_s28 = smov [#allocation3]  }
  0x82   : > { %p2085_p0 = scmp.ne.s32.totalorder %s2471_s6, %s2084_s26  ;;  %s2089_s27 = sshll.u32 %s2221_s28, 4  ;;  %s2090_s27 = int_to_ptr.vmem [resolvable:$false] %s2089_s27 }
  0x83   : > { %s2091_s8 = scalar_lea.vmem %s2090_s27, 256  ;;  %p2092_p8 = scmp.lt.s32.totalorder %s2471_s6, %s2090_s27 }
  0x84   : > { %p2087_p4 = pnand %p2085_p0, %p2073_p7  ;;  %p2093_p3 = scmp.lt.s32.totalorder %s2091_s8, %s2084_s26 }
  0x86   : > { %p2088_p5 = pneg %p2087_p4  ;;  %p2094_p1 = por %p2093_p3, %p2092_p8 }
  0x88   : > { %p2095_p10 = pnand %p2094_p1, %p2088_p5 }
  0x8a   : > { %2098 = shalt.err (!%p2095_p10)
}
  0x8b   : > { %1805 = dma.hbm_to_vmem [thread:$0]  (!%p2475_p2), %s2469_s4, 128, %s2471_s6, %s475_s9  }
  0x8c   : > { %s1602_s24 = sshll.u32 %s2211_s16, 4  ;;  %s495_s22 = scalar_lea.vmem [#allocation6], %s2454_s18 }
  0x8d   : > { %s502_s17 = sshll.u32 %s495_s22, 4  ;;  %s500_s27 = scalar_lea.hbm %s2711_s1, %s1602_s24  ;;  %s503_s17 = int_to_ptr.vmem [resolvable:$true] %s502_s17 }
  0x8e   : > { %s2764_s8 = sand.u32 1, %s2211_s16   ;;  %s2099_s0 = scalar_lea.hbm %s500_s27, 16 }
  0x8f   : > { %s493_s26 = scalar_lea.sflag [#allocation7], %s2764_s8  ;;  %p2100_p1 = scmp.ne.s32.totalorder %s500_s27, %s2099_s0 }
  0x90   : > { %s2104_s4 = scalar_lea.hbm %s2711_s1, 32  ;;  %p2105_p11 = scmp.lt.s32.totalorder %s500_s27, %s2711_s1 }
  0x91   : > { %p2102_p3 = pnand %p2100_p1, %p2073_p7  ;;  %p2106_p12 = scmp.lt.s32.totalorder %s2104_s4, %s2099_s0 }
  0x93   : > { %p2103_p9 = pneg %p2102_p3  ;;  %p2107_p13 = por %p2106_p12, %p2105_p11 }
  0x95   : > { %p2108_p0 = pnand %p2107_p13, %p2103_p9 }
  0x97   : > { %2111 = shalt.err (!%p2108_p0)
}
  0x98   : > { %s2112_s18 = scalar_lea.vmem %s503_s17, 16  ;;  %s2222_s24 = smov [#allocation6]  }
  0x99   : > { %p2113_p4 = scmp.ne.s32.totalorder %s503_s17, %s2112_s18  ;;  %s2117_s22 = sshll.u32 %s2222_s24, 4  ;;  %s2118_s22 = int_to_ptr.vmem [resolvable:$false] %s2117_s22 }
  0x9a   : > { %s2119_s15 = scalar_lea.vmem %s2118_s22, 32  ;;  %p2120_p10 = scmp.lt.s32.totalorder %s503_s17, %s2118_s22 }
  0x9b   : > { %p2115_p5 = pnand %p2113_p4, %p2073_p7  ;;  %p2121_p1 = scmp.lt.s32.totalorder %s2119_s15, %s2112_s18 }
  0x9d   : > { %p2116_p8 = pneg %p2115_p5  ;;  %p2122_p3 = por %p2121_p1, %p2120_p10 }
  0x9f   : > { %p2123_p6 = pnand %p2122_p3, %p2116_p8 }
  0xa1   : > { %2126 = shalt.err (!%p2123_p6)
}
  0xa2   : > { %1808 = dma.hbm_to_vmem [thread:$0]  (!%p2475_p2), %s500_s27, 16, %s503_s17, %s493_s26  }
  0xa3   : > { %p2765_p9 = scmp.ne.s32.totalorder %s2744_s20, 0 }
  0xa4   : > { %s2529_s0 = sand.u32 (!%p2765_p9), 1, %s2203_s30   ;;  %p2766_p7 = scmp.ne.s32.totalorder (!%p2765_p9), %s2759_s21, 0 }
  0xa5   : > { %511 = sbr.rel (%p2765_p9) target bundleno = 2678 (0xa76), region = 76  ;;  %s1604_s23 = sshll.u32 (!%p2765_p9), %s2529_s0, 3 }
  0xa6   : > { %s514_s2 = scalar_lea.sflag (!%p2765_p9), [#allocation4], %s2529_s0  ;;  %s517_s28 = scalar_lea.vmem (!%p2765_p9), [#allocation3], %s1604_s23 }
  0xaa   : > { %2170 = dma.done.wait (%p2766_p7), %s514_s2, 128  }
  0xab   : > { %2172 = vsyncadd (%p2766_p7), %s514_s2, 4294967168  ;;  %s522_s7 = sand.u32 1, %s2336_s19   ;;  %s525_s17 = scalar_lea.vmem [#allocation6], %s2529_s0 }
  0xac   : > { %s523_s20 = scalar_lea.sflag [#allocation7], %s522_s7 }
  0xad   : > { %2174 = dma.done.wait (%p2766_p7), %s523_s20, 16  }
  0xae   : > { %2176 = vsyncadd (%p2766_p7), %s523_s20, 4294967280  ;;  %p2767_p6 = scmp.eq.s32.totalorder %s2336_s19, 0 }
  0xb0   : > { %2178 = dma.done.wait (%p2767_p6), [#allocation7], 256   ;;  %p2768_p2 = pmov %p2767_p6 }
  0xb2   : > { %2180 = vsyncadd (%p2768_p2), [#allocation7], 4294967040  ;;  %p2769_p11 = pmov %p2768_p2 }
  0xb3   : > { %p2770_p12 = pmov %p2768_p2 }
  0xb4   : > { %2182 = dma.done.wait (%p2769_p11), [#allocation10], 272  }
  0xb5   : > { %2184 = vsyncadd (%p2770_p12), [#allocation10], 4294967024  ;;  %p2771_p13 = pmov %p2768_p2 }
  0xb6   : > { %p2772_p0 = pmov %p2768_p2 }
  0xb7   : > { %2186 = dma.done.wait (%p2771_p13), [#allocation13], 272  }
  0xb8   : > { %2188 = vsyncadd (%p2772_p0), [#allocation13], 4294967024  ;;  %p2773_p4 = pmov %p2772_p0 }
  0xb9   : > { %p2774_p5 = pmov %p2772_p0 }
  0xba   : > { %2190 = dma.done.wait (%p2773_p4), [#allocation16], 16  }
  0xbb   : > { %2192 = vsyncadd (%p2774_p5), [#allocation16], 4294967280  ;;  %v2223_v0 = vmov 0.0   ;;  %vm2224_vm0 = vmmov 0   ;;  %v1883_v1 = vld [vmem:[#allocation8 + $0x8] sm:$0xff]   ;;  %v1884_v2 = vld [vmem:[#allocation8] sm:$0xff]  }
  0xbc   : > { %1673 = vmatprep.subr.bf16.mxu0 %v2223_v0  ;;  %1677 = vmatprep.mubr.msk.bf16.mxu0 %vm2224_vm0, %v2223_v0  ;;  %v2567_v3 = vld [vmem:[%s517_s28] sm:$0xff]  ;;  %vm624_vm1 = vcmask 261120   ;;  %v1612_v5 = vld [vmem:[%s2713_s3] ss:$0 sm:$0xff]  ;;  %s2225_s8 = smov 96   ;;  %s2226_s26 = smov 120  }
  0xbd   : > { %1681 = vmatprep.subr.bf16.mxu1 %v2223_v0  ;;  %1683 = vmatprep.mubr.msk.bf16.mxu1 %vm2224_vm0, %v2223_v0  ;;  %v604_v4 = vpack.c.bf16 %v2567_v3, %v2567_v3  ;;  %s2227_s4 = smov 88   ;;  %s2228_s6 = smov 80   ;;  %vm681_vm2 = vcmask 64512   ;;  %v1616_v25 = vld [vmem:[%s525_s17] ss:$0 sm:$0xff]  ;;  %vm745_vm3 = vcmask 1043456  }
  0xbe   : > { %1674 = vmatpush3.bf16.msra.mxu0 %v1883_v1  ;;  %s2229_s9 = smov 112   ;;  %s2230_s18 = smov 72   ;;  %vm905_vm4 = vcmask 130112   ;;  %vm1021_vm5 = vcmask 195712   ;;  %vm1137_vm6 = vcmask 261312  }
  0xbf   : > { %1675 = vmatprep.subr.bf16.mxu0 %v2223_v0  ;;  %s2231_s24 = smov 104   ;;  %s2232_s22 = smov 56  }
  0xc0   : > { %s2233_s15 = smov 64   ;;  %s2234_s2 = smov 40  }
  0xc1   : > { %s2235_s28 = smov 48   ;;  %s2236_s7 = smov 8  }
  0xc2   : > { %1676 = vmatpush3.bf16.msra.mxu0 %v1884_v2  ;;  %s2237_s20 = smov 16   ;;  %s2238_s17 = smov 24  }
  0xc3   : > { %1687 = vmatprep.subr.bf16.mxu0 %v2223_v0  ;;  %s2775_s27 = sld [smem:[#allocation35_spill]]  ;;  %p2776_p10 = scmp.ne.s32.totalorder %s2760_s14, 0 }
  0xc5   : > { %1678 = vmatmul.mubr.msk.bf16.vlgmr.msra.gmra.mxu0 %vm624_vm1, %v604_v4 }
  0xc6   : > { %1689 = vmatprep.mubr.msk.bf16.mxu0 %vm2224_vm0, %v2223_v0 }
 0x185   : > { %v662_v6 = vpop.f32.mrf.mxu0 }
 0x186   : > { %v663_v7 = vadd.f32 %v1612_v5, %v662_v6 }
 0x187   : > { %v1679_v8 = vpop.f32.mrf.mxu0 }
 0x188   : > { %v668_v9 = vmul.f32 0.35355338, %v663_v7  ;;  %v2579_v10 = vpack.c.bf16 %v663_v7, %v663_v7 }
 0x189   : > { %v665_v11 = vpop.f32.mrf.mxu0 }
 0x18a   : > { %v670_v12 = vpack.c.bf16 %v668_v9, %v668_v9  ;;  %679 = vrot.lane.b32.xlu0 %v2579_v10, %s2225_s8 }
 0x18b   : > { %v1680_v13 = vpop.f32.mrf.mxu0 }
 0x18c   : > { %791 = vrot.lane.b32.xlu1 %v670_v12, %s2226_s26  ;;  %s1431_s26 = scalar_lea.sflag [#allocation5], %s2529_s0 }
 0x18e   : > { %793 = vrot.lane.b32.xlu0 %v2579_v10, %s2227_s4 }
 0x190   : > { %909 = vrot.lane.b32.xlu1 %v2579_v10, %s2228_s6  ;;  %s2239_s6 = smov [#allocation17]  }
 0x192   : > { %907 = vrot.lane.b32.xlu0 %v670_v12, %s2229_s9 }
 0x194   : > { %1025 = vrot.lane.b32.xlu1 %v2579_v10, %s2230_s18 }
 0x196   : > { %1023 = vrot.lane.b32.xlu0 %v670_v12, %s2231_s24 }
 0x1fc   : > { %v680_v14 = vpop.permute.xlu0 %679 }
 0x1fd   : > { %v686_v15 = vsel %vm681_vm2, %v680_v14, 0 }
 0x1fe   : > { %1682 = vmatpush3.bf16.xpose.msra.mxu1 %v686_v15  ;;  %v792_v17 = vpop.permute.xlu1 %791 }
 0x1ff   : > { %1693 = vmatprep.subr.bf16.mxu1 %v2223_v0 }
 0x200   : > { %v794_v16 = vpop.permute.xlu0 %793 }
 0x201   : > { %v799_v18 = vsel %vm681_vm2, %v794_v16, 0 }
 0x202   : > { %v910_v19 = vpop.permute.xlu1 %909 }
 0x203   : > { %v915_v20 = vsel %vm681_vm2, %v910_v19, 0 }
 0x204   : > { %v908_v22 = vpop.permute.xlu0 %907 }
 0x205   : > { %1684 = vmatmul.mubr.msk.bf16.vlgmr.msra.gmra.mxu1 %vm681_vm2, %v670_v12 }
 0x206   : > { %1694 = vmatpush3.bf16.xpose.msra.mxu1 %v799_v18  ;;  %1695 = vmatprep.mubr.msk.bf16.mxu1 %vm2224_vm0, %v2223_v0  ;;  %v1026_v21 = vpop.permute.xlu1 %1025 }
 0x207   : > { %1705 = vmatprep.subr.bf16.mxu1 %v2223_v0  ;;  %v1031_v23 = vsel %vm681_vm2, %v1026_v21, 0 }
 0x208   : > { %v1024_v24 = vpop.permute.xlu0 %1023 }
 0x20d   : > { %1696 = vmatmul.mubr.msk.bf16.vlgmr.msra.gmra.mxu1 %vm681_vm2, %v792_v17 }
 0x20e   : > { %1706 = vmatpush3.bf16.xpose.msra.mxu1 %v915_v20  ;;  %1707 = vmatprep.mubr.msk.bf16.mxu1 %vm2224_vm0, %v2223_v0 }
 0x20f   : > { %1717 = vmatprep.subr.bf16.mxu1 %v2223_v0 }
 0x215   : > { %1708 = vmatmul.mubr.msk.bf16.vlgmr.msra.gmra.mxu1 %vm681_vm2, %v908_v22 }
 0x216   : > { %1718 = vmatpush3.bf16.xpose.msra.mxu1 %v1031_v23  ;;  %1719 = vmatprep.mubr.msk.bf16.mxu1 %vm2224_vm0, %v2223_v0 }
 0x217   : > { %1729 = vmatprep.subr.bf16.mxu1 %v2223_v0 }
 0x21d   : > { %1720 = vmatmul.mubr.msk.bf16.vlgmr.msra.gmra.mxu1 %vm681_vm2, %v1024_v24 }
 0x21e   : > { %1733 = vmatprep.mubr.msk.bf16.mxu1 %vm2224_vm0, %v2223_v0 }
 0x2c5   : > { %v722_v26 = vpop.f32.mrf.mxu1 }
 0x2c6   : > { %v723_v27 = vadd.f32 %v1616_v25, %v722_v26 }
 0x2c7   : > { %v1685_v28 = vpop.f32.mrf.mxu1 }
 0x2c8   : > { %v728_v29 = vsel %vm681_vm2, %v723_v27, -inf }
 0x2c9   : > { %729 = vmax.xlane.f32.xlu1 %v728_v29  ;;  %v725_v30 = vpop.f32.mrf.mxu1 }
 0x2cb   : > { %v1686_v31 = vpop.f32.mrf.mxu1 }
 0x2cd   : > { %v835_v32 = vpop.f32.mrf.mxu1 }
 0x2ce   : > { %v836_v33 = vadd.f32 %v1616_v25, %v835_v32 }
 0x2cf   : > { %v1697_v34 = vpop.f32.mrf.mxu1 }
 0x2d0   : > { %v841_v35 = vsel %vm681_vm2, %v836_v33, -inf }
 0x2d1   : > { %842 = vmax.xlane.f32.xlu0 %v841_v35  ;;  %v838_v36 = vpop.f32.mrf.mxu1 }
 0x2d3   : > { %v1698_v37 = vpop.f32.mrf.mxu1 }
 0x2d5   : > { %v951_v38 = vpop.f32.mrf.mxu1 }
 0x2d6   : > { %v952_v39 = vadd.f32 %v1616_v25, %v951_v38 }
 0x2d7   : > { %v1709_v40 = vpop.f32.mrf.mxu1 }
 0x2d8   : > { %v957_v41 = vsel %vm681_vm2, %v952_v39, -inf  ;;  %v1885_v40 = vld [vmem:[#allocation9 + $0x8] sm:$0xff]  }
 0x2d9   : > { %958 = vmax.xlane.f32.xlu0 %v957_v41  ;;  %v954_v42 = vpop.f32.mrf.mxu1  ;;  %1730 = vmatpush3.bf16.msra.mxu1 %v1885_v40 }
 0x2da   : > { %v1886_v42 = vld [vmem:[#allocation9] sm:$0xff]   ;;  %1731 = vmatprep.subr.bf16.mxu1 %v2223_v0 }
 0x2db   : > { %v1710_v43 = vpop.f32.mrf.mxu1 }
 0x2dd   : > { %v1067_v44 = vpop.f32.mrf.mxu1  ;;  %1732 = vmatpush3.bf16.msra.mxu1 %v1886_v42 }
 0x2de   : > { %v1068_v45 = vadd.f32 %v1616_v25, %v1067_v44  ;;  %1745 = vmatprep.subr.bf16.mxu1 %v2223_v0 }
 0x2df   : > { %v1721_v46 = vpop.f32.mrf.mxu1 }
 0x2e0   : > { %v1073_v47 = vsel %vm681_vm2, %v1068_v45, -inf }
 0x2e1   : > { %1074 = vmax.xlane.f32.xlu1 %v1073_v47  ;;  %v1070_v48 = vpop.f32.mrf.mxu1 }
 0x2e3   : > { %v1722_v49 = vpop.f32.mrf.mxu1 }
 0x352   : > { %v730_v50 = vpop.xlane.xlu1 %729 }
 0x353   : > { %v731_v51 = vsub.f32 %v723_v27, %v730_v50 }
 0x355   : > { %v732_v52 = vmul.f32 1.442695, %v731_v51 }
 0x357   : > { %1891 = vpow2.f32 %v732_v52 }
 0x35a   : > { %v843_v53 = vpop.xlane.xlu0 %842 }
 0x35b   : > { %v844_v54 = vsub.f32 %v836_v33, %v843_v53 }
 0x35d   : > { %v845_v55 = vmul.f32 1.442695, %v844_v54 }
 0x35f   : > { %1893 = vpow2.f32 %v845_v55  ;;  %v1625_v55 = vld [vmem:[%s2715_s5] ss:$0 sm:$0xff] }
 0x362   : > { %v959_v56 = vpop.xlane.xlu0 %958 }
 0x363   : > { %v960_v57 = vsub.f32 %v952_v39, %v959_v56 }
 0x364   : > { %v1892_v58 = vpop.eup %1891 }
 0x365   : > { %v961_v59 = vmul.f32 1.442695, %v960_v57  ;;  %v734_v60 = vsel %vm681_vm2, %v1892_v58, 0.0 }
 0x366   : > { %735 = vadd.xlane.f32.xlu0 %v734_v60 }
 0x367   : > { %1895 = vpow2.f32 %v961_v59 }
 0x36a   : > { %v1075_v2 = vpop.xlane.xlu1 %1074 }
 0x36b   : > { %v1076_v4 = vsub.f32 %v1068_v45, %v1075_v2 }
 0x36c   : > { %v1894_v61 = vpop.eup %1893 }
 0x36d   : > { %v847_v62 = vsel %vm681_vm2, %v1894_v61, 0.0  ;;  %v1077_v5 = vmul.f32 1.442695, %v1076_v4 }
 0x36e   : > { %848 = vadd.xlane.f32.xlu1 %v847_v62 }
 0x36f   : > { %1897 = vpow2.f32 %v1077_v5 }
 0x374   : > { %v1896_v63 = vpop.eup %1895 }
 0x375   : > { %v963_v1 = vsel %vm681_vm2, %v1896_v63, 0.0 }
 0x376   : > { %964 = vadd.xlane.f32.xlu0 %v963_v1 }
 0x37c   : > { %v1898_v6 = vpop.eup %1897 }
 0x37d   : > { %v1079_v7 = vsel %vm681_vm2, %v1898_v6, 0.0 }
 0x37f   : > { %853 = vrot.lane.b32.xlu1 %v2579_v10, %s2232_s22 }
 0x38c   : > { %740 = vrot.lane.b32.xlu0 %v2579_v10, %s2233_s15 }
 0x390   : > { %1085 = vrot.lane.b32.xlu0 %v2579_v10, %s2234_s2 }
 0x3a3   : > { %1080 = vadd.xlane.f32.xlu1 %v1079_v7  ;;  %v1888_v7 = vld [vmem:[#allocation14] sm:$0xff]  }
 0x3b4   : > { %969 = vrot.lane.b32.xlu1 %v2579_v10, %s2235_s28  ;;  %s1642_s28 = sshll.u32 %s2336_s19, 7  ;;  %s2131_s19 = sshll.u32 %s2239_s6, 4  ;;  %s2132_s19 = int_to_ptr.vmem [resolvable:$false] %s2131_s19 }
 0x3b5   : > { %s1442_s8 = scalar_lea.hbm %s2775_s27, %s1642_s28 }
 0x3ef   : > { %v736_v8 = vpop.xlane.xlu0 %735 }
 0x3f0   : > { %1899 = vrcp.f32 %v736_v8 }
 0x3f7   : > { %v849_v9 = vpop.xlane.xlu1 %848 }
 0x3f8   : > { %1901 = vrcp.f32 %v849_v9 }
 0x3fb   : > { %v854_v16 = vpop.permute.xlu1 %853 }
 0x3fc   : > { %v859_v19 = vsel %vm745_vm3, %v854_v16, 0 }
 0x3fd   : > { %v1900_v11 = vpop.eup %1899 }
 0x3fe   : > { %v738_v13 = vmul.f32 %v1900_v11, %v1892_v58 }
 0x3ff   : > { %v965_v12 = vpop.xlane.xlu0 %964 }
 0x400   : > { %v739_v17 = vpack.c.bf16 %v738_v13, %v738_v13  ;;  %1903 = vrcp.f32 %v965_v12  ;;  %v1629_v12 = vld [vmem:[#allocation11] ss:$0 sm:$0xff] }
 0x403   : > { %v741_v14 = vpop.permute.xlu0 %740 }
 0x404   : > { %v747_v15 = vsel %vm745_vm3, %v741_v14, 0  ;;  %v1630_v14 = vld [vmem:[#allocation12] ss:$0 sm:$0xff] }
 0x405   : > { %1688 = vmatpush3.bf16.msra.mxu0 %v747_v15  ;;  %v1902_v18 = vpop.eup %1901 }
 0x406   : > { %1699 = vmatprep.subr.bf16.mxu0 %v2223_v0  ;;  %v851_v10 = vmul.f32 %v1902_v18, %v1894_v61  ;;  %v1889_v18 = vld [vmem:[%s2720_s10 + $0x8] sm:$0xff]  }
 0x407   : > { %v1086_v26 = vpop.permute.xlu0 %1085 }
 0x408   : > { %1690 = vmatmul.mubr.msk.bf16.vlgmr.msra.gmra.mxu0 %vm681_vm2, %v739_v17  ;;  %v852_v20 = vpack.c.bf16 %v851_v10, %v851_v10  ;;  %v1091_v28 = vsel %vm745_vm3, %v1086_v26, 0  ;;  %v1631_v10 = vld [vmem:[#allocation15] ss:$0 sm:$0xff] }
 0x409   : > { %1700 = vmatpush3.bf16.msra.mxu0 %v859_v19  ;;  %1701 = vmatprep.mubr.msk.bf16.mxu0 %vm2224_vm0, %v2223_v0  ;;  %v1890_v19 = vld [vmem:[%s2720_s10] sm:$0xff]  }
 0x40a   : > { %1711 = vmatprep.subr.bf16.mxu0 %v2223_v0 }
 0x40d   : > { %v1904_v21 = vpop.eup %1903 }
 0x40e   : > { %v967_v23 = vmul.f32 %v1904_v21, %v1896_v63 }
 0x410   : > { %1702 = vmatmul.mubr.msk.bf16.vlgmr.msra.gmra.mxu0 %vm681_vm2, %v852_v20  ;;  %v968_v27 = vpack.c.bf16 %v967_v23, %v967_v23 }
 0x411   : > { %1713 = vmatprep.mubr.msk.bf16.mxu0 %vm2224_vm0, %v2223_v0 }
 0x42c   : > { %v1081_v22 = vpop.xlane.xlu1 %1080 }
 0x42d   : > { %1905 = vrcp.f32 %v1081_v22 }
 0x430   : > { %v970_v24 = vpop.permute.xlu1 %969 }
 0x431   : > { %v975_v25 = vsel %vm745_vm3, %v970_v24, 0 }
 0x432   : > { %1712 = vmatpush3.bf16.msra.mxu0 %v975_v25 }
 0x433   : > { %1723 = vmatprep.subr.bf16.mxu0 %v2223_v0 }
 0x435   : > { %1714 = vmatmul.mubr.msk.bf16.vlgmr.msra.gmra.mxu0 %vm681_vm2, %v968_v27 }
 0x436   : > { %1724 = vmatpush3.bf16.msra.mxu0 %v1091_v28  ;;  %1725 = vmatprep.mubr.msk.bf16.mxu0 %vm2224_vm0, %v2223_v0 }
 0x437   : > { %1737 = vmatprep.subr.bf16.mxu0 %v2223_v0 }
 0x43a   : > { %v1906_v29 = vpop.eup %1905 }
 0x43b   : > { %v1083_v30 = vmul.f32 %v1906_v29, %v1898_v6  ;;  %v1887_v6 = vld [vmem:[#allocation14 + $0x8] sm:$0xff]  }
 0x43d   : > { %v1084_v31 = vpack.c.bf16 %v1083_v30, %v1083_v30 }
 0x43f   : > { %1726 = vmatmul.mubr.msk.bf16.vlgmr.msra.gmra.mxu0 %vm681_vm2, %v1084_v31 }
 0x440   : > { %1741 = vmatprep.mubr.msk.bf16.mxu0 %vm2224_vm0, %v2223_v0  ;;  %1738 = vmatpush3.bf16.msra.mxu0 %v1887_v6 }
 0x441   : > { %1739 = vmatprep.subr.bf16.mxu0 %v2223_v0 }
 0x444   : > { %1740 = vmatpush3.bf16.msra.mxu0 %v1888_v7  ;;  %v1640_v7 = vld [vmem:[%s2723_s13] ss:$0 sm:$0xff] }
 0x4c8   : > { %v783_v32 = vpop.f32.mrf.mxu0 }
 0x4c9   : > { %789 = vst.msk [vmem:[#allocation2] sm:$0xff] %vm681_vm2, %v783_v32 }
 0x4ca   : > { %v1691_v33 = vpop.f32.mrf.mxu0 }
 0x4cc   : > { %v786_v34 = vpop.f32.mrf.mxu0 }
 0x4ce   : > { %v1692_v35 = vpop.f32.mrf.mxu0 }
 0x4d0   : > { %v895_v36 = vpop.f32.mrf.mxu0 }
 0x4d1   : > { %902 = vrot.lane.b32.xlu1 %v895_v36, %s2236_s7  ;;  %s597_s7 = scalar_lea.vmem [#allocation17], %s1604_s23  ;;  %s2133_s23 = scalar_lea.vmem %s2132_s19, 256 }
 0x4d2   : > { %v1703_v37 = vpop.f32.mrf.mxu0 }
 0x4d4   : > { %v898_v38 = vpop.f32.mrf.mxu0 }
 0x4d6   : > { %v1704_v39 = vpop.f32.mrf.mxu0 }
 0x4f5   : > { %v1011_v41 = vpop.f32.mrf.mxu0 }
 0x4f6   : > { %1018 = vrot.lane.b32.xlu0 %v1011_v41, %s2237_s20  ;;  %s1444_s20 = sshll.u32 %s597_s7, 4  ;;  %s1445_s20 = int_to_ptr.vmem [resolvable:$true] %s1444_s20 }
 0x4f7   : > { %v1715_v43 = vpop.f32.mrf.mxu0  ;;  %s2127_s4 = scalar_lea.vmem %s1445_s20, 128  ;;  %p2134_p9 = scmp.lt.s32.totalorder %s1445_s20, %s2132_s19 }
 0x4f8   : > { %p2128_p8 = scmp.ne.s32.totalorder %s1445_s20, %s2127_s4  ;;  %p2135_p7 = scmp.lt.s32.totalorder %s2133_s23, %s2127_s4 }
 0x4f9   : > { %v1014_v44 = vpop.f32.mrf.mxu0 }
 0x4fa   : > { %p2129_p1 = pnand %p2128_p8, %p2776_p10  ;;  %p2136_p6 = por %p2135_p7, %p2134_p9 }
 0x4fb   : > { %v1716_v45 = vpop.f32.mrf.mxu0 }
 0x4fc   : > { %p2130_p3 = pneg %p2129_p1 }
 0x4fe   : > { %p2137_p2 = pnand %p2136_p6, %p2130_p3 }
 0x4ff   : > { %v1127_v46 = vpop.f32.mrf.mxu0 }
 0x500   : > { %1134 = vrot.lane.b32.xlu1 %v1127_v46, %s2238_s17 }
 0x501   : > { %v1727_v47 = vpop.f32.mrf.mxu0 }
 0x503   : > { %v1130_v48 = vpop.f32.mrf.mxu0 }
 0x505   : > { %v1728_v49 = vpop.f32.mrf.mxu0 }
 0x543   : > { %v903_v50 = vpop.permute.xlu1 %902 }
 0x544   : > { %906 = vst.msk [vmem:[#allocation2] sm:$0xff] %vm905_vm4, %v903_v50  ;;  %v1635_v50 = vld [vmem:[%s2721_s11] ss:$0 sm:$0xff] }
 0x568   : > { %v1019_v51 = vpop.permute.xlu0 %1018 }
 0x569   : > { %1022 = vst.msk [vmem:[#allocation2] sm:$0xff] %vm1021_vm5, %v1019_v51 }
 0x572   : > { %v1135_v52 = vpop.permute.xlu1 %1134 }
 0x573   : > { %1138 = vst.msk [vmem:[#allocation2] sm:$0xff] %vm1137_vm6, %v1135_v52 }
 0x57a   : > { %v1139_v53 = vld [vmem:[#allocation2] sm:$0xff] }
 0x57b   : > { %v1144_v54 = vpack.c.bf16 %v1139_v53, %v1139_v53 }
 0x57d   : > { %1734 = vmatmul.mubr.msk.bf16.vlgmr.msra.gmra.mxu1 %vm624_vm1, %v1144_v54 }
 0x57e   : > { %1749 = vmatprep.mubr.msk.bf16.mxu1 %vm2224_vm0, %v2223_v0  ;;  %1746 = vmatpush3.bf16.msra.mxu1 %v1889_v18 }
 0x57f   : > { %1747 = vmatprep.subr.bf16.mxu1 %v2223_v0 }
 0x582   : > { %1748 = vmatpush3.bf16.msra.mxu1 %v1890_v19 }
 0x63d   : > { %v1201_v56 = vpop.f32.mrf.mxu1 }
 0x63e   : > { %v1202_v57 = vadd.f32 %v1625_v55, %v1201_v56 }
 0x63f   : > { %v1735_v58 = vpop.f32.mrf.mxu1 }
 0x640   : > { %v1207_v59 = vadd.f32 %v1202_v57, %v2567_v3 }
 0x641   : > { %v1204_v60 = vpop.f32.mrf.mxu1 }
 0x642   : > { %v1210_v61 = vsel %vm624_vm1, %v1207_v59, 0.0 }
 0x643   : > { %1211 = vadd.xlane.f32.xlu0 %v1210_v61  ;;  %v1736_v62 = vpop.f32.mrf.mxu1 }
 0x6cc   : > { %v1212_v63 = vpop.xlane.xlu0 %1211 }
 0x6cd   : > { %v1214_v1 = vmul.f32 0.03125, %v1212_v63 }
 0x6cf   : > { %v1215_v2 = vsub.f32 %v1207_v59, %v1214_v1 }
 0x6d1   : > { %v1216_v4 = vmul.f32 %v1215_v2, %v1215_v2 }
 0x6d3   : > { %v1217_v5 = vsel %vm624_vm1, %v1216_v4, 0.0 }
 0x6d4   : > { %1218 = vadd.xlane.f32.xlu1 %v1217_v5  ;;  %v1639_v5 = vld [vmem:[%s2722_s12] ss:$0 sm:$0xff] }
 0x75d   : > { %v1219_v8 = vpop.xlane.xlu1 %1218 }
 0x75e   : > { %v1220_v3 = vmul.f32 0.03125, %v1219_v8 }
 0x760   : > { %v1221_v9 = vadd.f32 1e-05, %v1220_v3 }
 0x762   : > { %1907 = vrsqrt.f32 %v1221_v9 }
 0x76f   : > { %v1908_v11 = vpop.eup %1907 }
 0x770   : > { %v1223_v13 = vmul.f32 %v1908_v11, %v1215_v2 }
 0x772   : > { %v1230_v15 = vmul.f32 %v1629_v12, %v1223_v13 }
 0x774   : > { %v1237_v16 = vadd.f32 %v1630_v14, %v1230_v15 }
 0x776   : > { %v1242_v17 = vpack.c.bf16 %v1237_v16, %v1237_v16 }
 0x778   : > { %1742 = vmatmul.mubr.msk.bf16.vlgmr.msra.gmra.mxu0 %vm624_vm1, %v1242_v17 }
 0x838   : > { %v1299_v20 = vpop.f32.mrf.mxu0 }
 0x839   : > { %v1300_v21 = vadd.f32 %v1631_v10, %v1299_v20 }
 0x83a   : > { %v1743_v22 = vpop.f32.mrf.mxu0 }
 0x83b   : > { %v1306_v23 = vmul.f32 0.70710677, %v1300_v21  ;;  %v1305_v46 = vmul.f32 0.5, %v1300_v21 }
 0x83c   : > { %v1302_v24 = vpop.f32.mrf.mxu0 }
 0x83d   : > { %v1307_v25 = vand.u32 2147483647, %v1306_v23  ;;  %vm1327_vm7 = vcmp.lt.f32.partialorder %v1306_v23, 0.0 }
 0x83e   : > { %v1744_v26 = vpop.f32.mrf.mxu0 }
 0x83f   : > { %v1308_v27 = vmul.f32 0.3275911, %v1307_v25  ;;  %v1321_v29 = vsub.f32 0.0, %v1307_v25 }
 0x841   : > { %v1309_v28 = vadd.f32 1.0, %v1308_v27  ;;  %v1322_v30 = vmul.f32 %v1321_v29, %v1307_v25 }
 0x843   : > { %1909 = vrcp.f32 %v1309_v28  ;;  %v1323_v32 = vmul.f32 1.442695, %v1322_v30 }
 0x845   : > { %1911 = vpow2.f32 %v1323_v32 }
 0x850   : > { %v1910_v31 = vpop.eup %1909 }
 0x851   : > { %v1312_v0 = vmul.f32 1.0614054, %v1910_v31 }
 0x852   : > { %v1912_v41 = vpop.eup %1911 }
 0x853   : > { %v1313_v33 = vadd.f32 -1.4531521, %v1312_v0 }
 0x855   : > { %v1314_v34 = vmul.f32 %v1910_v31, %v1313_v33 }
 0x857   : > { %v1315_v35 = vadd.f32 1.4214138, %v1314_v34 }
 0x859   : > { %v1316_v36 = vmul.f32 %v1910_v31, %v1315_v35 }
 0x85b   : > { %v1317_v37 = vadd.f32 -0.28449672, %v1316_v36 }
 0x85d   : > { %v1318_v38 = vmul.f32 %v1910_v31, %v1317_v37 }
 0x85f   : > { %v1319_v39 = vadd.f32 0.2548296, %v1318_v38 }
 0x861   : > { %v1320_v40 = vmul.f32 %v1910_v31, %v1319_v39 }
 0x863   : > { %v1325_v42 = vmul.f32 %v1912_v41, %v1320_v40 }
 0x865   : > { %v1326_v43 = vsub.f32 1.0, %v1325_v42 }
 0x867   : > { %v1328_v44 = vsub.f32 0.0, %v1326_v43 }
 0x869   : > { %v1329_v45 = vsel %vm1327_vm7, %v1328_v44, %v1326_v43 }
 0x86a   : > { %v1330_v47 = vadd.f32 1.0, %v1329_v45 }
 0x86c   : > { %v1331_v48 = vmul.f32 %v1330_v47, %v1305_v46 }
 0x86e   : > { %v1336_v49 = vpack.c.bf16 %v1331_v48, %v1331_v48 }
 0x870   : > { %1750 = vmatmul.mubr.msk.bf16.vlgmr.msra.gmra.mxu1 %vm624_vm1, %v1336_v49 }
 0x930   : > { %v1393_v51 = vpop.f32.mrf.mxu1 }
 0x931   : > { %v1394_v52 = vadd.f32 %v1635_v50, %v1393_v51 }
 0x932   : > { %v1751_v53 = vpop.f32.mrf.mxu1 }
 0x933   : > { %v1399_v54 = vadd.f32 %v1394_v52, %v1237_v16 }
 0x934   : > { %v1396_v55 = vpop.f32.mrf.mxu1 }
 0x935   : > { %v1402_v56 = vsel %vm624_vm1, %v1399_v54, 0.0 }
 0x936   : > { %1403 = vadd.xlane.f32.xlu0 %v1402_v56  ;;  %v1752_v57 = vpop.f32.mrf.mxu1 }
 0x9bf   : > { %v1404_v58 = vpop.xlane.xlu0 %1403 }
 0x9c0   : > { %v1405_v59 = vmul.f32 0.03125, %v1404_v58 }
 0x9c2   : > { %v1406_v60 = vsub.f32 %v1399_v54, %v1405_v59 }
 0x9c4   : > { %v1407_v61 = vmul.f32 %v1406_v60, %v1406_v60 }
 0x9c6   : > { %v1408_v62 = vsel %vm624_vm1, %v1407_v61, 0.0 }
 0x9c7   : > { %1409 = vadd.xlane.f32.xlu0 %v1408_v62 }
 0xa50   : > { %v1410_v63 = vpop.xlane.xlu0 %1409 }
 0xa51   : > { %v1411_v1 = vmul.f32 0.03125, %v1410_v63 }
 0xa53   : > { %v1412_v2 = vadd.f32 1e-05, %v1411_v1 }
 0xa55   : > { %1913 = vrsqrt.f32 %v1412_v2 }
 0xa62   : > { %v1914_v4 = vpop.eup %1913 }
 0xa63   : > { %v1414_v6 = vmul.f32 %v1914_v4, %v1406_v60 }
 0xa65   : > { %v1421_v8 = vmul.f32 %v1639_v5, %v1414_v6 }
 0xa67   : > { %v1428_v3 = vadd.f32 %v1640_v7, %v1421_v8 }
 0xa69   : > { %1429 = vst.msk [vmem:[%s597_s7] sm:$0xff] %vm624_vm1, %v1428_v3 }
 0xa6a   : > { %2140 = shalt.err (!%p2137_p2)
}
 0xa6b   : > { %s2141_s9 = scalar_lea.hbm %s1442_s8, 128  ;;  %s2145_s24 = scalar_lea.hbm %s2775_s27, 256 }
 0xa6c   : > { %p2142_p11 = scmp.ne.s32.totalorder %s1442_s8, %s2141_s9  ;;  %p2146_p0 = scmp.lt.s32.totalorder %s1442_s8, %s2775_s27 }
 0xa6d   : > { %p2147_p4 = scmp.lt.s32.totalorder %s2145_s24, %s2141_s9 }
 0xa6e   : > { %p2143_p12 = pnand %p2142_p11, %p2776_p10 }
 0xa6f   : > { %p2148_p5 = por %p2147_p4, %p2146_p0 }
 0xa70   : > { %p2144_p13 = pneg %p2143_p12 }
 0xa72   : > { %p2149_p8 = pnand %p2148_p5, %p2144_p13 }
 0xa74   : > { %2152 = shalt.err (!%p2149_p8)
}
 0xa75   : > { %1781 = dma.vmem_to_hbm [thread:$0]  (%p2776_p10), %s1445_s20, 128, %s1442_s8, %s1431_s26  }
 0xa76 PF: > { %s1456_s2 = sand.u32 1, %s2199_s29   ;;  %p2777_p1 = scmp.ne.s32.totalorder %s2761_s25, 0 }
 0xa77   : > { %p2778_p3 = scmp.ge.s32.totalorder %s2211_s16, 2  ;;  %s1457_s28 = scalar_lea.sflag [#allocation5], %s1456_s2 }
 0xa79   : > { %p1810_p9 = pnand %p2778_p3, %p2777_p1 }
 0xa7b   : > { %p1811_p7 = pneg %p1810_p9 }
 0xa7d   : > { %2194 = dma.done.wait (%p1811_p7), %s1457_s28, 128  }
 0xa7e   : > { %2196 = vsyncadd (%p1811_p7), %s1457_s28, 4294967168  ;;  %s2779_s16 = sld [smem:[#allocation26_spill]]  ;;  %s2782_s29 = smov %s2203_s30 }
 0xa7f   : > { %s2780_s7 = sld [smem:[#allocation25_spill]] }
 0xa80   : > { %s2781_s15 = sld [smem:[#allocation27_spill]] }
 0xa84   : > { %p33_p6 = scmp.ge.s32.totalorder %s2779_s16, 4  }
 0xa85   : > { %s2783_s30 = smov %s2780_s7 }
 0xa86   :  { %35 = sbr.rel (!%p33_p6) target bundleno = 19 (0x13), region = 158 }
 0xa8b   :  { %1462 = vsyncpa [#allocation4], 1 }
 0xa8c   :  { %1464 = vsyncpa [#allocation4 + $0x1], 1 }
 0xa8d   :  { %1465 = vsyncpa [#allocation7], 1 }
 0xa8e   :  { %1467 = vsyncpa [#allocation7 + $0x1], 1 }
 0xa8f   :  { %1468 = vsyncpa [#allocation10], 1 }
 0xa90   :  { %1469 = vsyncpa [#allocation13], 1 }
 0xa91   :  { %1470 = vsyncpa [#allocation16], 1 }
 0xa92   :  { %1471 = vsyncpa [#allocation5], 1 }
 0xa93   :  { %1473 = vsyncpa [#allocation5 + $0x1], 1 }

</bundles_post_ra>
